<compile_context>
chip_gen: v7x
topology: tpu7x:2x2x1
jax: 0.10.0
libtpu: 0.0.40
codegen_flags: <defaults>
</compile_context>

<pallas_src>
from functools import partial

import jax
import jax.numpy as jnp
from jax.experimental import pallas as pl
from jax.experimental.pallas import tpu as pltpu


BN_EPS = 1e-5  # torch.nn.BatchNorm2d default


# --------------------------------------------------------------------------------------
# one-time parameter / constant construction (outside the kernel)
# --------------------------------------------------------------------------------------
def _interp_matrix(n_in, n_out):
    """Row-stochastic 1-D bilinear interpolation matrix, align_corners=True."""
    dst = jnp.arange(n_out, dtype=jnp.float32)
    src = dst * (n_in - 1) / (n_out - 1)
    i0 = jnp.clip(jnp.floor(src).astype(jnp.int32), 0, n_in - 2)
    frac = src - i0.astype(jnp.float32)
    rows = jnp.arange(n_out)
    a = jnp.zeros((n_out, n_in), jnp.float32)
    a = a.at[rows, i0].add(1.0 - frac)
    a = a.at[rows, i0 + 1].add(frac)
    return a


def _fold_conv_bn_taps(w, gamma, beta, mean, var):
    """Fold eval-mode BatchNorm into a bias-free 3x3 conv, per-tap layout.

    w: (Cout, Cin, 3, 3) torch layout.  Returns
      taps: (9, Cout, Cin)  tap index t = ky*3 + kx, BN scale folded in,
      bias: (Cout, 1)       folded BN shift (broadcasts along the lane/spatial axis).
    """
    c_out, c_in = w.shape[0], w.shape[1]
    scale = gamma / jnp.sqrt(var + BN_EPS)                         # (Cout,)
    w_s = w * scale[:, None, None, None]
    taps = jnp.transpose(w_s, (2, 3, 0, 1)).reshape(9, c_out, c_in)
    bias = (beta - mean * scale)[:, None]
    return taps, bias


# --------------------------------------------------------------------------------------
# the fused kernel (one grid step == one image of the batch)
# --------------------------------------------------------------------------------------
def _decoder_block_kernel(ah_ref, aw_ref, mask_ref, x_ref, skip_ref,
                          w1_ref, b1_ref, w2_ref, b2_ref, o_ref,
                          *, cin, h, w, h2, w2, n, pad):
    """Per-image layouts (channels-first everywhere):
       ah_ref:  (H2, H)  row-interp matrix          aw_ref: (W2, W)  column-interp matrix
       mask_ref:(2, N+2*pad) column-border masks for the dx=+1 / dx=-1 conv taps
       x_ref:   (1, Cin, H, W)                      skip_ref: (1, Cskip, H2*W2)
       w*_ref:  (9, Cout, Cin) folded conv+BN taps  b*_ref:  (Cout, 1) folded BN bias
       o_ref:   (1, Cout2, H2*W2)                   -- lane-dense (N = H2*W2) output store
    """
    f32 = jnp.float32

    # ---- bilinear x2 upsample (align_corners=True): separable, batched over channels -------
    x = x_ref[0]                                                          # (Cin, H, W)
    ahb = jnp.broadcast_to(ah_ref[...][None], (cin, h2, h))               # (Cin, H2, H)
    awb = jnp.broadcast_to(aw_ref[...][None], (cin, w2, w))               # (Cin, W2, W)
    t = jnp.einsum('cIh,chw->cIw', ahb, x, preferred_element_type=f32)    # (Cin, H2, W)
    up = jnp.einsum('cIw,cXw->cIX', t, awb, preferred_element_type=f32)   # (Cin, H2, W2)
    # Flatten rows onto the lane axis (row-major flat spatial).  With fully general Mosaic
    # reshape support this is just `up.reshape(cin, n)`; the explicit per-row concat keeps the
    # lowering to trivially supported slice/concat ops.
    up_flat = jnp.concatenate([up[:, i, :] for i in range(h2)], axis=1)   # (Cin, N)

    # ---- channel concat with skip (skip arrives pre-flattened in its native memory order) ---
    act = jnp.concatenate([up_flat, skip_ref[0]], axis=0)                 # (Cin+Cskip, N)

    mask_p = mask_ref[0:1, :]   # zeroes positions a dx=+1 tap must not read (right border)
    mask_m = mask_ref[1:2, :]   # zeroes positions a dx=-1 tap must not read (left border)

    # ---- 3x3 conv + folded BN + ReLU: nine shift+matmul accumulations, lane-dense N --------
    def conv3x3_bn_relu(a, w_ref, b_ref):
        c = a.shape[0]
        zp = jnp.zeros((c, pad), f32)                # 128-aligned halo: supplies the +-1 row pad
        buf = jnp.concatenate([zp, a, zp], axis=1)   # (C, N + 2*pad)
        srcs = {0: buf, 1: buf * mask_p, -1: buf * mask_m}
        cout = b_ref.shape[0]
        acc = jnp.zeros((cout, n), f32)
        for dy in (-1, 0, 1):
            for dx in (-1, 0, 1):
                tap = (dy + 1) * 3 + (dx + 1)
                start = pad + dy * w2 + dx
                shifted = srcs[dx][:, start:start + n]        # static lane-offset slice (shift)
                acc = acc + jnp.dot(w_ref[tap], shifted, preferred_element_type=f32)
        return jnp.maximum(acc + b_ref[...], 0.0)             # (Cout, N)

    y1 = conv3x3_bn_relu(act, w1_ref, b1_ref)
    y2 = conv3x3_bn_relu(y1, w2_ref, b2_ref)
    o_ref[0] = y2.astype(o_ref.dtype)


# --------------------------------------------------------------------------------------
# wrapper: NCHW in / NCHW out, single fused pallas_call, batch-parallel grid
# --------------------------------------------------------------------------------------
def decoder_block(x, skip, params):
    """x: (B, Cin, H, W) f32, skip: (B, Cskip, 2H, 2W) f32 -> (B, Cout, 2H, 2W) f32."""
    B, Cin, H, W = x.shape
    H2, W2 = 2 * H, 2 * W
    Cskip = skip.shape[1]
    Cc = Cin + Cskip
    C1 = params["w1"].shape[0]
    C2 = params["w2"].shape[0]
    N = H2 * W2
    PAD = ((W2 + 1 + 127) // 128) * 128          # lane halo: multiple of 128, >= W2 + 1
    assert PAD >= W2 + 1

    # ---- one-time constants / folded parameters (free, outside the kernel) ----
    ah = _interp_matrix(H, H2)                    # (H2, H)
    aw = _interp_matrix(W, W2)                    # (W2, W)
    w1_t, b1 = _fold_conv_bn_taps(params["w1"], params["bn1_g"], params["bn1_b"],
                                  params["bn1_m"], params["bn1_v"])
    w2_t, b2 = _fold_conv_bn_taps(params["w2"], params["bn2_g"], params["bn2_b"],
                                  params["bn2_m"], params["bn2_v"])

    # Column-border masks over the padded flat-spatial (lane) axis.  Flat position q holds
    # data element (i, j) at q = PAD + i*W2 + j, so its column index is (q - PAD) mod W2.
    q = jnp.arange(N + 2 * PAD)
    col = jnp.mod(q - PAD, W2)
    masks = jnp.stack([(col != 0).astype(jnp.float32),         # for dx = +1 taps
                       (col != W2 - 1).astype(jnp.float32)])   # for dx = -1 taps

    # layout plumbing is free: contiguous reshape only, NO transposes (channels-first kept)
    skip_flat = skip.reshape(B, Cskip, N)

    kernel = partial(_decoder_block_kernel, cin=Cin, h=H, w=W, h2=H2, w2=W2, n=N, pad=PAD)

    out_flat = pl.pallas_call(
        kernel,
        out_shape=jax.ShapeDtypeStruct((B, C2, N), jnp.float32),
        grid=(B,),
        in_specs=[
            pl.BlockSpec((H2, H), lambda b: (0, 0)),
            pl.BlockSpec((W2, W), lambda b: (0, 0)),
            pl.BlockSpec((2, N + 2 * PAD), lambda b: (0, 0)),
            pl.BlockSpec((1, Cin, H, W), lambda b: (b, 0, 0, 0)),
            pl.BlockSpec((1, Cskip, N), lambda b: (b, 0, 0)),
            pl.BlockSpec((9, C1, Cc), lambda b: (0, 0, 0)),
            pl.BlockSpec((C1, 1), lambda b: (0, 0)),
            pl.BlockSpec((9, C2, C1), lambda b: (0, 0, 0)),
            pl.BlockSpec((C2, 1), lambda b: (0, 0)),
        ],
        out_specs=pl.BlockSpec((1, C2, N), lambda b: (b, 0, 0)),
        compiler_params=pltpu.CompilerParams(
            dimension_semantics=("parallel",),     # v7x: one image per TensorCore
        ),
    )(ah, aw, masks, x, skip_flat, w1_t, b1, w2_t, b2)

    return out_flat.reshape(B, C2, H2, W2)         # free reshape, still channels-first


# --------------------------------------------------------------------------------------
# pure-JAX reference (independent path: XLA conv + separable einsum upsample)
# --------------------------------------------------------------------------------------
def _ref_bn(y, g, b, m, v):
    s = (g / jnp.sqrt(v + BN_EPS))[None, :, None, None]
    return (y - m[None, :, None, None]) * s + b[None, :, None, None]


def ref_decoder_block(x, skip, p):
    B, C, H, W = x.shape
    ah, aw = _interp_matrix(H, 2 * H), _interp_matrix(W, 2 * W)
    up = jnp.einsum("Yy,bcyx->bcYx", ah, x)
    up = jnp.einsum("Xx,bcYx->bcYX", aw, up)
    z = jnp.concatenate([up, skip], axis=1)
    y = jax.lax.conv_general_dilated(z, p["w1"], (1, 1), ((1, 1), (1, 1)),
                                     dimension_numbers=("NCHW", "OIHW", "NCHW"))
    y = jax.nn.relu(_ref_bn(y, p["bn1_g"], p["bn1_b"], p["bn1_m"], p["bn1_v"]))
    y = jax.lax.conv_general_dilated(y, p["w2"], (1, 1), ((1, 1), (1, 1)),
                                     dimension_numbers=("NCHW", "OIHW", "NCHW"))
    y = jax.nn.relu(_ref_bn(y, p["bn2_g"], p["bn2_b"], p["bn2_m"], p["bn2_v"]))
    return y


# --------------------------------------------------------------------------------------
# main
# --------------------------------------------------------------------------------------
if __name__ == "__main__":
    B, CIN, CSKIP, COUT, H, W = 2, 4, 4, 8, 16, 16

    key = jax.random.PRNGKey(0)
    k = jax.random.split(key, 12)
    x = jax.random.normal(k[0], (B, CIN, H, W), jnp.float32)
    skip = jax.random.normal(k[1], (B, CSKIP, 2 * H, 2 * W), jnp.float32)

    params = {
        "w1": jax.random.normal(k[2], (COUT, CIN + CSKIP, 3, 3), jnp.float32) * 0.2,
        "bn1_g": 1.0 + 0.1 * jax.random.normal(k[3], (COUT,), jnp.float32),
        "bn1_b": 0.1 * jax.random.normal(k[4], (COUT,), jnp.float32),
        "bn1_m": 0.1 * jax.random.normal(k[5], (COUT,), jnp.float32),
        "bn1_v": jax.random.uniform(k[6], (COUT,), jnp.float32, minval=0.5, maxval=1.5),
        "w2": jax.random.normal(k[7], (COUT, COUT, 3, 3), jnp.float32) * 0.2,
        "bn2_g": 1.0 + 0.1 * jax.random.normal(k[8], (COUT,), jnp.float32),
        "bn2_b": 0.1 * jax.random.normal(k[9], (COUT,), jnp.float32),
        "bn2_m": 0.1 * jax.random.normal(k[10], (COUT,), jnp.float32),
        "bn2_v": jax.random.uniform(k[11], (COUT,), jnp.float32, minval=0.5, maxval=1.5),
    }

    out = decoder_block(x, skip, params)
    out = jax.block_until_ready(out)

    ref = ref_decoder_block(x, skip, params)
    assert out.shape == (B, COUT, 2 * H, 2 * W), out.shape
    max_err = float(jnp.max(jnp.abs(out - ref)))
    assert jnp.allclose(out, ref, atol=1e-4, rtol=1e-4), max_err

    print("KERNEL_OK")
</pallas_src>

<mosaic_0001>
module attributes {stable_mosaic.version = 11 : i64} {
  func.func @_decoder_block_kernel(%arg0: i32, %arg1: memref<32x16xf32, #tpu.memory_space<vmem>>, %arg2: memref<32x16xf32, #tpu.memory_space<vmem>>, %arg3: memref<2x1280xf32, #tpu.memory_space<vmem>>, %arg4: memref<1x4x16x16xf32, #tpu.memory_space<vmem>>, %arg5: memref<1x4x1024xf32, #tpu.memory_space<vmem>>, %arg6: memref<9x8x8xf32, #tpu.memory_space<vmem>>, %arg7: memref<8x1xf32, #tpu.memory_space<vmem>>, %arg8: memref<9x8x8xf32, #tpu.memory_space<vmem>>, %arg9: memref<8x1xf32, #tpu.memory_space<vmem>>, %arg10: memref<1x8x1024xf32, #tpu.memory_space<vmem>>) attributes {dimension_semantics = [#tpu.dimension_semantics<parallel>], iteration_bounds = array<i64: 2>, scalar_prefetch = 0 : i64, scratch_operands = 0 : i64, tpu.core_type = #tpu.core_type<tc>, window_params = [{pipeline_mode = #tpu.pipeline_mode<synchronous>, transform_indices = @transform_0, window_bounds = array<i64: 32, 16>}, {pipeline_mode = #tpu.pipeline_mode<synchronous>, transform_indices = @transform_1, window_bounds = array<i64: 32, 16>}, {pipeline_mode = #tpu.pipeline_mode<synchronous>, transform_indices = @transform_2, window_bounds = array<i64: 2, 1280>}, {transform_indices = @transform_3, window_bounds = array<i64: 1, 4, 16, 16>}, {transform_indices = @transform_4, window_bounds = array<i64: 1, 4, 1024>}, {pipeline_mode = #tpu.pipeline_mode<synchronous>, transform_indices = @transform_5, window_bounds = array<i64: 9, 8, 8>}, {pipeline_mode = #tpu.pipeline_mode<synchronous>, transform_indices = @transform_6, window_bounds = array<i64: 8, 1>}, {pipeline_mode = #tpu.pipeline_mode<synchronous>, transform_indices = @transform_7, window_bounds = array<i64: 9, 8, 8>}, {pipeline_mode = #tpu.pipeline_mode<synchronous>, transform_indices = @transform_8, window_bounds = array<i64: 8, 1>}, {transform_indices = @transform_9, window_bounds = array<i64: 1, 8, 1024>}]} {
    %c0 = arith.constant 0 : index
    %c0_0 = arith.constant 0 : index
    %c0_1 = arith.constant 0 : index
    %c0_2 = arith.constant 0 : index
    %0 = vector.load %arg4[%c0, %c0_0, %c0_1, %c0_2] : memref<1x4x16x16xf32, #tpu.memory_space<vmem>>, vector<1x4x16x16xf32>
    %1 = vector.shape_cast %0 : vector<1x4x16x16xf32> to vector<4x16x16xf32>
    %c0_3 = arith.constant 0 : index
    %c0_4 = arith.constant 0 : index
    %2 = vector.load %arg1[%c0_3, %c0_4] : memref<32x16xf32, #tpu.memory_space<vmem>>, vector<32x16xf32>
    %3 = vector.shape_cast %2 : vector<32x16xf32> to vector<1x32x16xf32>
    %4 = vector.shape_cast %3 : vector<1x32x16xf32> to vector<1x32x16xf32>
    %5 = vector.broadcast %4 : vector<1x32x16xf32> to vector<4x32x16xf32>
    %c0_5 = arith.constant 0 : index
    %c0_6 = arith.constant 0 : index
    %6 = vector.load %arg2[%c0_5, %c0_6] : memref<32x16xf32, #tpu.memory_space<vmem>>, vector<32x16xf32>
    %7 = vector.shape_cast %6 : vector<32x16xf32> to vector<1x32x16xf32>
    %8 = vector.shape_cast %7 : vector<1x32x16xf32> to vector<1x32x16xf32>
    %9 = vector.broadcast %8 : vector<1x32x16xf32> to vector<4x32x16xf32>
    "tpu.trace_start"() <{level = 10 : i32, message = "cIh,chw->cIw"}> : () -> ()
    %cst = arith.constant dense<0.000000e+00> : vector<4x32x16xf32>
    %10 = tpu.matmul %5, %1, %cst {dimension_numbers = #tpu.dot_dimension_numbers<[2], [1], [1], [2], [0, 0, 0, 1, 1, 2], [0], [0]>} : vector<4x32x16xf32>, vector<4x16x16xf32>, vector<4x32x16xf32> -> vector<4x32x16xf32>
    "tpu.trace_stop"() : () -> ()
    "tpu.trace_start"() <{level = 10 : i32, message = "cIw,cXw->cIX"}> : () -> ()
    %cst_7 = arith.constant dense<0.000000e+00> : vector<4x32x32xf32>
    %11 = tpu.matmul %10, %9, %cst_7 {dimension_numbers = #tpu.dot_dimension_numbers<[2], [2], [1], [1], [0, 0, 0, 1, 1, 1], [0], [0]>} : vector<4x32x16xf32>, vector<4x32x16xf32>, vector<4x32x32xf32> -> vector<4x32x32xf32>
    "tpu.trace_stop"() : () -> ()
    %12 = vector.extract_strided_slice %11 {offsets = [0, 0, 0], sizes = [4, 1, 32], strides = [1, 1, 1]} : vector<4x32x32xf32> to vector<4x1x32xf32>
    %13 = vector.shape_cast %12 : vector<4x1x32xf32> to vector<4x32xf32>
    %14 = vector.extract_strided_slice %11 {offsets = [0, 1, 0], sizes = [4, 1, 32], strides = [1, 1, 1]} : vector<4x32x32xf32> to vector<4x1x32xf32>
    %15 = vector.shape_cast %14 : vector<4x1x32xf32> to vector<4x32xf32>
    %16 = vector.extract_strided_slice %11 {offsets = [0, 2, 0], sizes = [4, 1, 32], strides = [1, 1, 1]} : vector<4x32x32xf32> to vector<4x1x32xf32>
    %17 = vector.shape_cast %16 : vector<4x1x32xf32> to vector<4x32xf32>
    %18 = vector.extract_strided_slice %11 {offsets = [0, 3, 0], sizes = [4, 1, 32], strides = [1, 1, 1]} : vector<4x32x32xf32> to vector<4x1x32xf32>
    %19 = vector.shape_cast %18 : vector<4x1x32xf32> to vector<4x32xf32>
    %20 = vector.extract_strided_slice %11 {offsets = [0, 4, 0], sizes = [4, 1, 32], strides = [1, 1, 1]} : vector<4x32x32xf32> to vector<4x1x32xf32>
    %21 = vector.shape_cast %20 : vector<4x1x32xf32> to vector<4x32xf32>
    %22 = vector.extract_strided_slice %11 {offsets = [0, 5, 0], sizes = [4, 1, 32], strides = [1, 1, 1]} : vector<4x32x32xf32> to vector<4x1x32xf32>
    %23 = vector.shape_cast %22 : vector<4x1x32xf32> to vector<4x32xf32>
    %24 = vector.extract_strided_slice %11 {offsets = [0, 6, 0], sizes = [4, 1, 32], strides = [1, 1, 1]} : vector<4x32x32xf32> to vector<4x1x32xf32>
    %25 = vector.shape_cast %24 : vector<4x1x32xf32> to vector<4x32xf32>
    %26 = vector.extract_strided_slice %11 {offsets = [0, 7, 0], sizes = [4, 1, 32], strides = [1, 1, 1]} : vector<4x32x32xf32> to vector<4x1x32xf32>
    %27 = vector.shape_cast %26 : vector<4x1x32xf32> to vector<4x32xf32>
    %28 = vector.extract_strided_slice %11 {offsets = [0, 8, 0], sizes = [4, 1, 32], strides = [1, 1, 1]} : vector<4x32x32xf32> to vector<4x1x32xf32>
    %29 = vector.shape_cast %28 : vector<4x1x32xf32> to vector<4x32xf32>
    %30 = vector.extract_strided_slice %11 {offsets = [0, 9, 0], sizes = [4, 1, 32], strides = [1, 1, 1]} : vector<4x32x32xf32> to vector<4x1x32xf32>
    %31 = vector.shape_cast %30 : vector<4x1x32xf32> to vector<4x32xf32>
    %32 = vector.extract_strided_slice %11 {offsets = [0, 10, 0], sizes = [4, 1, 32], strides = [1, 1, 1]} : vector<4x32x32xf32> to vector<4x1x32xf32>
    %33 = vector.shape_cast %32 : vector<4x1x32xf32> to vector<4x32xf32>
    %34 = vector.extract_strided_slice %11 {offsets = [0, 11, 0], sizes = [4, 1, 32], strides = [1, 1, 1]} : vector<4x32x32xf32> to vector<4x1x32xf32>
    %35 = vector.shape_cast %34 : vector<4x1x32xf32> to vector<4x32xf32>
    %36 = vector.extract_strided_slice %11 {offsets = [0, 12, 0], sizes = [4, 1, 32], strides = [1, 1, 1]} : vector<4x32x32xf32> to vector<4x1x32xf32>
    %37 = vector.shape_cast %36 : vector<4x1x32xf32> to vector<4x32xf32>
    %38 = vector.extract_strided_slice %11 {offsets = [0, 13, 0], sizes = [4, 1, 32], strides = [1, 1, 1]} : vector<4x32x32xf32> to vector<4x1x32xf32>
    %39 = vector.shape_cast %38 : vector<4x1x32xf32> to vector<4x32xf32>
    %40 = vector.extract_strided_slice %11 {offsets = [0, 14, 0], sizes = [4, 1, 32], strides = [1, 1, 1]} : vector<4x32x32xf32> to vector<4x1x32xf32>
    %41 = vector.shape_cast %40 : vector<4x1x32xf32> to vector<4x32xf32>
    %42 = vector.extract_strided_slice %11 {offsets = [0, 15, 0], sizes = [4, 1, 32], strides = [1, 1, 1]} : vector<4x32x32xf32> to vector<4x1x32xf32>
    %43 = vector.shape_cast %42 : vector<4x1x32xf32> to vector<4x32xf32>
    %44 = vector.extract_strided_slice %11 {offsets = [0, 16, 0], sizes = [4, 1, 32], strides = [1, 1, 1]} : vector<4x32x32xf32> to vector<4x1x32xf32>
    %45 = vector.shape_cast %44 : vector<4x1x32xf32> to vector<4x32xf32>
    %46 = vector.extract_strided_slice %11 {offsets = [0, 17, 0], sizes = [4, 1, 32], strides = [1, 1, 1]} : vector<4x32x32xf32> to vector<4x1x32xf32>
    %47 = vector.shape_cast %46 : vector<4x1x32xf32> to vector<4x32xf32>
    %48 = vector.extract_strided_slice %11 {offsets = [0, 18, 0], sizes = [4, 1, 32], strides = [1, 1, 1]} : vector<4x32x32xf32> to vector<4x1x32xf32>
    %49 = vector.shape_cast %48 : vector<4x1x32xf32> to vector<4x32xf32>
    %50 = vector.extract_strided_slice %11 {offsets = [0, 19, 0], sizes = [4, 1, 32], strides = [1, 1, 1]} : vector<4x32x32xf32> to vector<4x1x32xf32>
    %51 = vector.shape_cast %50 : vector<4x1x32xf32> to vector<4x32xf32>
    %52 = vector.extract_strided_slice %11 {offsets = [0, 20, 0], sizes = [4, 1, 32], strides = [1, 1, 1]} : vector<4x32x32xf32> to vector<4x1x32xf32>
    %53 = vector.shape_cast %52 : vector<4x1x32xf32> to vector<4x32xf32>
    %54 = vector.extract_strided_slice %11 {offsets = [0, 21, 0], sizes = [4, 1, 32], strides = [1, 1, 1]} : vector<4x32x32xf32> to vector<4x1x32xf32>
    %55 = vector.shape_cast %54 : vector<4x1x32xf32> to vector<4x32xf32>
    %56 = vector.extract_strided_slice %11 {offsets = [0, 22, 0], sizes = [4, 1, 32], strides = [1, 1, 1]} : vector<4x32x32xf32> to vector<4x1x32xf32>
    %57 = vector.shape_cast %56 : vector<4x1x32xf32> to vector<4x32xf32>
    %58 = vector.extract_strided_slice %11 {offsets = [0, 23, 0], sizes = [4, 1, 32], strides = [1, 1, 1]} : vector<4x32x32xf32> to vector<4x1x32xf32>
    %59 = vector.shape_cast %58 : vector<4x1x32xf32> to vector<4x32xf32>
    %60 = vector.extract_strided_slice %11 {offsets = [0, 24, 0], sizes = [4, 1, 32], strides = [1, 1, 1]} : vector<4x32x32xf32> to vector<4x1x32xf32>
    %61 = vector.shape_cast %60 : vector<4x1x32xf32> to vector<4x32xf32>
    %62 = vector.extract_strided_slice %11 {offsets = [0, 25, 0], sizes = [4, 1, 32], strides = [1, 1, 1]} : vector<4x32x32xf32> to vector<4x1x32xf32>
    %63 = vector.shape_cast %62 : vector<4x1x32xf32> to vector<4x32xf32>
    %64 = vector.extract_strided_slice %11 {offsets = [0, 26, 0], sizes = [4, 1, 32], strides = [1, 1, 1]} : vector<4x32x32xf32> to vector<4x1x32xf32>
    %65 = vector.shape_cast %64 : vector<4x1x32xf32> to vector<4x32xf32>
    %66 = vector.extract_strided_slice %11 {offsets = [0, 27, 0], sizes = [4, 1, 32], strides = [1, 1, 1]} : vector<4x32x32xf32> to vector<4x1x32xf32>
    %67 = vector.shape_cast %66 : vector<4x1x32xf32> to vector<4x32xf32>
    %68 = vector.extract_strided_slice %11 {offsets = [0, 28, 0], sizes = [4, 1, 32], strides = [1, 1, 1]} : vector<4x32x32xf32> to vector<4x1x32xf32>
    %69 = vector.shape_cast %68 : vector<4x1x32xf32> to vector<4x32xf32>
    %70 = vector.extract_strided_slice %11 {offsets = [0, 29, 0], sizes = [4, 1, 32], strides = [1, 1, 1]} : vector<4x32x32xf32> to vector<4x1x32xf32>
    %71 = vector.shape_cast %70 : vector<4x1x32xf32> to vector<4x32xf32>
    %72 = vector.extract_strided_slice %11 {offsets = [0, 30, 0], sizes = [4, 1, 32], strides = [1, 1, 1]} : vector<4x32x32xf32> to vector<4x1x32xf32>
    %73 = vector.shape_cast %72 : vector<4x1x32xf32> to vector<4x32xf32>
    %74 = vector.extract_strided_slice %11 {offsets = [0, 31, 0], sizes = [4, 1, 32], strides = [1, 1, 1]} : vector<4x32x32xf32> to vector<4x1x32xf32>
    %75 = vector.shape_cast %74 : vector<4x1x32xf32> to vector<4x32xf32>
    %76 = tpu.concatenate %13, %15, %17, %19, %21, %23, %25, %27, %29, %31, %33, %35, %37, %39, %41, %43 in 1 : vector<4x32xf32>, vector<4x32xf32>, vector<4x32xf32>, vector<4x32xf32>, vector<4x32xf32>, vector<4x32xf32>, vector<4x32xf32>, vector<4x32xf32>, vector<4x32xf32>, vector<4x32xf32>, vector<4x32xf32>, vector<4x32xf32>, vector<4x32xf32>, vector<4x32xf32>, vector<4x32xf32>, vector<4x32xf32> -> vector<4x512xf32>
    %77 = tpu.concatenate %45, %47, %49, %51, %53, %55, %57, %59, %61, %63, %65, %67, %69, %71, %73, %75 in 1 : vector<4x32xf32>, vector<4x32xf32>, vector<4x32xf32>, vector<4x32xf32>, vector<4x32xf32>, vector<4x32xf32>, vector<4x32xf32>, vector<4x32xf32>, vector<4x32xf32>, vector<4x32xf32>, vector<4x32xf32>, vector<4x32xf32>, vector<4x32xf32>, vector<4x32xf32>, vector<4x32xf32>, vector<4x32xf32> -> vector<4x512xf32>
    %78 = tpu.concatenate %76, %77 in 1 : vector<4x512xf32>, vector<4x512xf32> -> vector<4x1024xf32>
    %c0_8 = arith.constant 0 : index
    %c0_9 = arith.constant 0 : index
    %c0_10 = arith.constant 0 : index
    %79 = vector.load %arg5[%c0_8, %c0_9, %c0_10] : memref<1x4x1024xf32, #tpu.memory_space<vmem>>, vector<1x4x1024xf32>
    %80 = vector.shape_cast %79 : vector<1x4x1024xf32> to vector<4x1024xf32>
    %81 = tpu.concatenate %78, %80 in 0 : vector<4x1024xf32>, vector<4x1024xf32> -> vector<8x1024xf32>
    %c0_11 = arith.constant 0 : index
    %c0_12 = arith.constant 0 : index
    %82 = vector.load %arg3[%c0_11, %c0_12] : memref<2x1280xf32, #tpu.memory_space<vmem>>, vector<1x1280xf32>
    %c1 = arith.constant 1 : index
    %c0_13 = arith.constant 0 : index
    %83 = vector.load %arg3[%c1, %c0_13] : memref<2x1280xf32, #tpu.memory_space<vmem>>, vector<1x1280xf32>
    %cst_14 = arith.constant 0.000000e+00 : f32
    %84 = vector.broadcast %cst_14 : f32 to vector<8x128xf32>
    %85 = tpu.concatenate %84, %81, %84 in 1 : vector<8x128xf32>, vector<8x1024xf32>, vector<8x128xf32> -> vector<8x1280xf32>
    %86 = vector.broadcast %82 : vector<1x1280xf32> to vector<8x1280xf32>
    %87 = arith.mulf %85, %86 : vector<8x1280xf32>
    %88 = vector.broadcast %83 : vector<1x1280xf32> to vector<8x1280xf32>
    %89 = arith.mulf %85, %88 : vector<8x1280xf32>
    %cst_15 = arith.constant 0.000000e+00 : f32
    %90 = vector.broadcast %cst_15 : f32 to vector<8x1024xf32>
    %91 = vector.extract_strided_slice %89 {offsets = [0, 95], sizes = [8, 1024], strides = [1, 1]} : vector<8x1280xf32> to vector<8x1024xf32>
    %c0_16 = arith.constant 0 : index
    %c0_17 = arith.constant 0 : index
    %c0_18 = arith.constant 0 : index
    %92 = vector.load %arg6[%c0_16, %c0_17, %c0_18] : memref<9x8x8xf32, #tpu.memory_space<vmem>>, vector<1x8x8xf32>
    %93 = vector.shape_cast %92 : vector<1x8x8xf32> to vector<8x8xf32>
    %cst_19 = arith.constant dense<0.000000e+00> : vector<8x1024xf32>
    %94 = tpu.matmul %93, %91, %cst_19 {dimension_numbers = #tpu.dot_dimension_numbers<[1], [0], [0], [1], [0, 0, 1, 1], [], []>} : vector<8x8xf32>, vector<8x1024xf32>, vector<8x1024xf32> -> vector<8x1024xf32>
    %95 = arith.addf %90, %94 : vector<8x1024xf32>
    %96 = vector.extract_strided_slice %85 {offsets = [0, 96], sizes = [8, 1024], strides = [1, 1]} : vector<8x1280xf32> to vector<8x1024xf32>
    %c1_20 = arith.constant 1 : index
    %c0_21 = arith.constant 0 : index
    %c0_22 = arith.constant 0 : index
    %97 = vector.load %arg6[%c1_20, %c0_21, %c0_22] : memref<9x8x8xf32, #tpu.memory_space<vmem>>, vector<1x8x8xf32>
    %98 = vector.shape_cast %97 : vector<1x8x8xf32> to vector<8x8xf32>
    %cst_23 = arith.constant dense<0.000000e+00> : vector<8x1024xf32>
    %99 = tpu.matmul %98, %96, %cst_23 {dimension_numbers = #tpu.dot_dimension_numbers<[1], [0], [0], [1], [0, 0, 1, 1], [], []>} : vector<8x8xf32>, vector<8x1024xf32>, vector<8x1024xf32> -> vector<8x1024xf32>
    %100 = arith.addf %95, %99 : vector<8x1024xf32>
    %101 = vector.extract_strided_slice %87 {offsets = [0, 97], sizes = [8, 1024], strides = [1, 1]} : vector<8x1280xf32> to vector<8x1024xf32>
    %c2 = arith.constant 2 : index
    %c0_24 = arith.constant 0 : index
    %c0_25 = arith.constant 0 : index
    %102 = vector.load %arg6[%c2, %c0_24, %c0_25] : memref<9x8x8xf32, #tpu.memory_space<vmem>>, vector<1x8x8xf32>
    %103 = vector.shape_cast %102 : vector<1x8x8xf32> to vector<8x8xf32>
    %cst_26 = arith.constant dense<0.000000e+00> : vector<8x1024xf32>
    %104 = tpu.matmul %103, %101, %cst_26 {dimension_numbers = #tpu.dot_dimension_numbers<[1], [0], [0], [1], [0, 0, 1, 1], [], []>} : vector<8x8xf32>, vector<8x1024xf32>, vector<8x1024xf32> -> vector<8x1024xf32>
    %105 = arith.addf %100, %104 : vector<8x1024xf32>
    %106 = vector.extract_strided_slice %89 {offsets = [0, 127], sizes = [8, 1024], strides = [1, 1]} : vector<8x1280xf32> to vector<8x1024xf32>
    %c3 = arith.constant 3 : index
    %c0_27 = arith.constant 0 : index
    %c0_28 = arith.constant 0 : index
    %107 = vector.load %arg6[%c3, %c0_27, %c0_28] : memref<9x8x8xf32, #tpu.memory_space<vmem>>, vector<1x8x8xf32>
    %108 = vector.shape_cast %107 : vector<1x8x8xf32> to vector<8x8xf32>
    %cst_29 = arith.constant dense<0.000000e+00> : vector<8x1024xf32>
    %109 = tpu.matmul %108, %106, %cst_29 {dimension_numbers = #tpu.dot_dimension_numbers<[1], [0], [0], [1], [0, 0, 1, 1], [], []>} : vector<8x8xf32>, vector<8x1024xf32>, vector<8x1024xf32> -> vector<8x1024xf32>
    %110 = arith.addf %105, %109 : vector<8x1024xf32>
    %111 = vector.extract_strided_slice %85 {offsets = [0, 128], sizes = [8, 1024], strides = [1, 1]} : vector<8x1280xf32> to vector<8x1024xf32>
    %c4 = arith.constant 4 : index
    %c0_30 = arith.constant 0 : index
    %c0_31 = arith.constant 0 : index
    %112 = vector.load %arg6[%c4, %c0_30, %c0_31] : memref<9x8x8xf32, #tpu.memory_space<vmem>>, vector<1x8x8xf32>
    %113 = vector.shape_cast %112 : vector<1x8x8xf32> to vector<8x8xf32>
    %cst_32 = arith.constant dense<0.000000e+00> : vector<8x1024xf32>
    %114 = tpu.matmul %113, %111, %cst_32 {dimension_numbers = #tpu.dot_dimension_numbers<[1], [0], [0], [1], [0, 0, 1, 1], [], []>} : vector<8x8xf32>, vector<8x1024xf32>, vector<8x1024xf32> -> vector<8x1024xf32>
    %115 = arith.addf %110, %114 : vector<8x1024xf32>
    %116 = vector.extract_strided_slice %87 {offsets = [0, 129], sizes = [8, 1024], strides = [1, 1]} : vector<8x1280xf32> to vector<8x1024xf32>
    %c5 = arith.constant 5 : index
    %c0_33 = arith.constant 0 : index
    %c0_34 = arith.constant 0 : index
    %117 = vector.load %arg6[%c5, %c0_33, %c0_34] : memref<9x8x8xf32, #tpu.memory_space<vmem>>, vector<1x8x8xf32>
    %118 = vector.shape_cast %117 : vector<1x8x8xf32> to vector<8x8xf32>
    %cst_35 = arith.constant dense<0.000000e+00> : vector<8x1024xf32>
    %119 = tpu.matmul %118, %116, %cst_35 {dimension_numbers = #tpu.dot_dimension_numbers<[1], [0], [0], [1], [0, 0, 1, 1], [], []>} : vector<8x8xf32>, vector<8x1024xf32>, vector<8x1024xf32> -> vector<8x1024xf32>
    %120 = arith.addf %115, %119 : vector<8x1024xf32>
    %121 = vector.extract_strided_slice %89 {offsets = [0, 159], sizes = [8, 1024], strides = [1, 1]} : vector<8x1280xf32> to vector<8x1024xf32>
    %c6 = arith.constant 6 : index
    %c0_36 = arith.constant 0 : index
    %c0_37 = arith.constant 0 : index
    %122 = vector.load %arg6[%c6, %c0_36, %c0_37] : memref<9x8x8xf32, #tpu.memory_space<vmem>>, vector<1x8x8xf32>
    %123 = vector.shape_cast %122 : vector<1x8x8xf32> to vector<8x8xf32>
    %cst_38 = arith.constant dense<0.000000e+00> : vector<8x1024xf32>
    %124 = tpu.matmul %123, %121, %cst_38 {dimension_numbers = #tpu.dot_dimension_numbers<[1], [0], [0], [1], [0, 0, 1, 1], [], []>} : vector<8x8xf32>, vector<8x1024xf32>, vector<8x1024xf32> -> vector<8x1024xf32>
    %125 = arith.addf %120, %124 : vector<8x1024xf32>
    %126 = vector.extract_strided_slice %85 {offsets = [0, 160], sizes = [8, 1024], strides = [1, 1]} : vector<8x1280xf32> to vector<8x1024xf32>
    %c7 = arith.constant 7 : index
    %c0_39 = arith.constant 0 : index
    %c0_40 = arith.constant 0 : index
    %127 = vector.load %arg6[%c7, %c0_39, %c0_40] : memref<9x8x8xf32, #tpu.memory_space<vmem>>, vector<1x8x8xf32>
    %128 = vector.shape_cast %127 : vector<1x8x8xf32> to vector<8x8xf32>
    %cst_41 = arith.constant dense<0.000000e+00> : vector<8x1024xf32>
    %129 = tpu.matmul %128, %126, %cst_41 {dimension_numbers = #tpu.dot_dimension_numbers<[1], [0], [0], [1], [0, 0, 1, 1], [], []>} : vector<8x8xf32>, vector<8x1024xf32>, vector<8x1024xf32> -> vector<8x1024xf32>
    %130 = arith.addf %125, %129 : vector<8x1024xf32>
    %131 = vector.extract_strided_slice %87 {offsets = [0, 161], sizes = [8, 1024], strides = [1, 1]} : vector<8x1280xf32> to vector<8x1024xf32>
    %c8 = arith.constant 8 : index
    %c0_42 = arith.constant 0 : index
    %c0_43 = arith.constant 0 : index
    %132 = vector.load %arg6[%c8, %c0_42, %c0_43] : memref<9x8x8xf32, #tpu.memory_space<vmem>>, vector<1x8x8xf32>
    %133 = vector.shape_cast %132 : vector<1x8x8xf32> to vector<8x8xf32>
    %cst_44 = arith.constant dense<0.000000e+00> : vector<8x1024xf32>
    %134 = tpu.matmul %133, %131, %cst_44 {dimension_numbers = #tpu.dot_dimension_numbers<[1], [0], [0], [1], [0, 0, 1, 1], [], []>} : vector<8x8xf32>, vector<8x1024xf32>, vector<8x1024xf32> -> vector<8x1024xf32>
    %135 = arith.addf %130, %134 : vector<8x1024xf32>
    %c0_45 = arith.constant 0 : index
    %c0_46 = arith.constant 0 : index
    %136 = vector.load %arg7[%c0_45, %c0_46] : memref<8x1xf32, #tpu.memory_space<vmem>>, vector<8x1xf32>
    %137 = vector.broadcast %136 : vector<8x1xf32> to vector<8x1024xf32>
    %138 = arith.addf %135, %137 : vector<8x1024xf32>
    %cst_47 = arith.constant 0.000000e+00 : f32
    %139 = vector.broadcast %cst_47 : f32 to vector<8x1024xf32>
    %140 = arith.maximumf %138, %139 : vector<8x1024xf32>
    %cst_48 = arith.constant 0.000000e+00 : f32
    %141 = vector.broadcast %cst_48 : f32 to vector<8x128xf32>
    %142 = tpu.concatenate %141, %140, %141 in 1 : vector<8x128xf32>, vector<8x1024xf32>, vector<8x128xf32> -> vector<8x1280xf32>
    %143 = vector.broadcast %82 : vector<1x1280xf32> to vector<8x1280xf32>
    %144 = arith.mulf %142, %143 : vector<8x1280xf32>
    %145 = vector.broadcast %83 : vector<1x1280xf32> to vector<8x1280xf32>
    %146 = arith.mulf %142, %145 : vector<8x1280xf32>
    %cst_49 = arith.constant 0.000000e+00 : f32
    %147 = vector.broadcast %cst_49 : f32 to vector<8x1024xf32>
    %148 = vector.extract_strided_slice %146 {offsets = [0, 95], sizes = [8, 1024], strides = [1, 1]} : vector<8x1280xf32> to vector<8x1024xf32>
    %c0_50 = arith.constant 0 : index
    %c0_51 = arith.constant 0 : index
    %c0_52 = arith.constant 0 : index
    %149 = vector.load %arg8[%c0_50, %c0_51, %c0_52] : memref<9x8x8xf32, #tpu.memory_space<vmem>>, vector<1x8x8xf32>
    %150 = vector.shape_cast %149 : vector<1x8x8xf32> to vector<8x8xf32>
    %cst_53 = arith.constant dense<0.000000e+00> : vector<8x1024xf32>
    %151 = tpu.matmul %150, %148, %cst_53 {dimension_numbers = #tpu.dot_dimension_numbers<[1], [0], [0], [1], [0, 0, 1, 1], [], []>} : vector<8x8xf32>, vector<8x1024xf32>, vector<8x1024xf32> -> vector<8x1024xf32>
    %152 = arith.addf %147, %151 : vector<8x1024xf32>
    %153 = vector.extract_strided_slice %142 {offsets = [0, 96], sizes = [8, 1024], strides = [1, 1]} : vector<8x1280xf32> to vector<8x1024xf32>
    %c1_54 = arith.constant 1 : index
    %c0_55 = arith.constant 0 : index
    %c0_56 = arith.constant 0 : index
    %154 = vector.load %arg8[%c1_54, %c0_55, %c0_56] : memref<9x8x8xf32, #tpu.memory_space<vmem>>, vector<1x8x8xf32>
    %155 = vector.shape_cast %154 : vector<1x8x8xf32> to vector<8x8xf32>
    %cst_57 = arith.constant dense<0.000000e+00> : vector<8x1024xf32>
    %156 = tpu.matmul %155, %153, %cst_57 {dimension_numbers = #tpu.dot_dimension_numbers<[1], [0], [0], [1], [0, 0, 1, 1], [], []>} : vector<8x8xf32>, vector<8x1024xf32>, vector<8x1024xf32> -> vector<8x1024xf32>
    %157 = arith.addf %152, %156 : vector<8x1024xf32>
    %158 = vector.extract_strided_slice %144 {offsets = [0, 97], sizes = [8, 1024], strides = [1, 1]} : vector<8x1280xf32> to vector<8x1024xf32>
    %c2_58 = arith.constant 2 : index
    %c0_59 = arith.constant 0 : index
    %c0_60 = arith.constant 0 : index
    %159 = vector.load %arg8[%c2_58, %c0_59, %c0_60] : memref<9x8x8xf32, #tpu.memory_space<vmem>>, vector<1x8x8xf32>
    %160 = vector.shape_cast %159 : vector<1x8x8xf32> to vector<8x8xf32>
    %cst_61 = arith.constant dense<0.000000e+00> : vector<8x1024xf32>
    %161 = tpu.matmul %160, %158, %cst_61 {dimension_numbers = #tpu.dot_dimension_numbers<[1], [0], [0], [1], [0, 0, 1, 1], [], []>} : vector<8x8xf32>, vector<8x1024xf32>, vector<8x1024xf32> -> vector<8x1024xf32>
    %162 = arith.addf %157, %161 : vector<8x1024xf32>
    %163 = vector.extract_strided_slice %146 {offsets = [0, 127], sizes = [8, 1024], strides = [1, 1]} : vector<8x1280xf32> to vector<8x1024xf32>
    %c3_62 = arith.constant 3 : index
    %c0_63 = arith.constant 0 : index
    %c0_64 = arith.constant 0 : index
    %164 = vector.load %arg8[%c3_62, %c0_63, %c0_64] : memref<9x8x8xf32, #tpu.memory_space<vmem>>, vector<1x8x8xf32>
    %165 = vector.shape_cast %164 : vector<1x8x8xf32> to vector<8x8xf32>
    %cst_65 = arith.constant dense<0.000000e+00> : vector<8x1024xf32>
    %166 = tpu.matmul %165, %163, %cst_65 {dimension_numbers = #tpu.dot_dimension_numbers<[1], [0], [0], [1], [0, 0, 1, 1], [], []>} : vector<8x8xf32>, vector<8x1024xf32>, vector<8x1024xf32> -> vector<8x1024xf32>
    %167 = arith.addf %162, %166 : vector<8x1024xf32>
    %168 = vector.extract_strided_slice %142 {offsets = [0, 128], sizes = [8, 1024], strides = [1, 1]} : vector<8x1280xf32> to vector<8x1024xf32>
    %c4_66 = arith.constant 4 : index
    %c0_67 = arith.constant 0 : index
    %c0_68 = arith.constant 0 : index
    %169 = vector.load %arg8[%c4_66, %c0_67, %c0_68] : memref<9x8x8xf32, #tpu.memory_space<vmem>>, vector<1x8x8xf32>
    %170 = vector.shape_cast %169 : vector<1x8x8xf32> to vector<8x8xf32>
    %cst_69 = arith.constant dense<0.000000e+00> : vector<8x1024xf32>
    %171 = tpu.matmul %170, %168, %cst_69 {dimension_numbers = #tpu.dot_dimension_numbers<[1], [0], [0], [1], [0, 0, 1, 1], [], []>} : vector<8x8xf32>, vector<8x1024xf32>, vector<8x1024xf32> -> vector<8x1024xf32>
    %172 = arith.addf %167, %171 : vector<8x1024xf32>
    %173 = vector.extract_strided_slice %144 {offsets = [0, 129], sizes = [8, 1024], strides = [1, 1]} : vector<8x1280xf32> to vector<8x1024xf32>
    %c5_70 = arith.constant 5 : index
    %c0_71 = arith.constant 0 : index
    %c0_72 = arith.constant 0 : index
    %174 = vector.load %arg8[%c5_70, %c0_71, %c0_72] : memref<9x8x8xf32, #tpu.memory_space<vmem>>, vector<1x8x8xf32>
    %175 = vector.shape_cast %174 : vector<1x8x8xf32> to vector<8x8xf32>
    %cst_73 = arith.constant dense<0.000000e+00> : vector<8x1024xf32>
    %176 = tpu.matmul %175, %173, %cst_73 {dimension_numbers = #tpu.dot_dimension_numbers<[1], [0], [0], [1], [0, 0, 1, 1], [], []>} : vector<8x8xf32>, vector<8x1024xf32>, vector<8x1024xf32> -> vector<8x1024xf32>
    %177 = arith.addf %172, %176 : vector<8x1024xf32>
    %178 = vector.extract_strided_slice %146 {offsets = [0, 159], sizes = [8, 1024], strides = [1, 1]} : vector<8x1280xf32> to vector<8x1024xf32>
    %c6_74 = arith.constant 6 : index
    %c0_75 = arith.constant 0 : index
    %c0_76 = arith.constant 0 : index
    %179 = vector.load %arg8[%c6_74, %c0_75, %c0_76] : memref<9x8x8xf32, #tpu.memory_space<vmem>>, vector<1x8x8xf32>
    %180 = vector.shape_cast %179 : vector<1x8x8xf32> to vector<8x8xf32>
    %cst_77 = arith.constant dense<0.000000e+00> : vector<8x1024xf32>
    %181 = tpu.matmul %180, %178, %cst_77 {dimension_numbers = #tpu.dot_dimension_numbers<[1], [0], [0], [1], [0, 0, 1, 1], [], []>} : vector<8x8xf32>, vector<8x1024xf32>, vector<8x1024xf32> -> vector<8x1024xf32>
    %182 = arith.addf %177, %181 : vector<8x1024xf32>
    %183 = vector.extract_strided_slice %142 {offsets = [0, 160], sizes = [8, 1024], strides = [1, 1]} : vector<8x1280xf32> to vector<8x1024xf32>
    %c7_78 = arith.constant 7 : index
    %c0_79 = arith.constant 0 : index
    %c0_80 = arith.constant 0 : index
    %184 = vector.load %arg8[%c7_78, %c0_79, %c0_80] : memref<9x8x8xf32, #tpu.memory_space<vmem>>, vector<1x8x8xf32>
    %185 = vector.shape_cast %184 : vector<1x8x8xf32> to vector<8x8xf32>
    %cst_81 = arith.constant dense<0.000000e+00> : vector<8x1024xf32>
    %186 = tpu.matmul %185, %183, %cst_81 {dimension_numbers = #tpu.dot_dimension_numbers<[1], [0], [0], [1], [0, 0, 1, 1], [], []>} : vector<8x8xf32>, vector<8x1024xf32>, vector<8x1024xf32> -> vector<8x1024xf32>
    %187 = arith.addf %182, %186 : vector<8x1024xf32>
    %188 = vector.extract_strided_slice %144 {offsets = [0, 161], sizes = [8, 1024], strides = [1, 1]} : vector<8x1280xf32> to vector<8x1024xf32>
    %c8_82 = arith.constant 8 : index
    %c0_83 = arith.constant 0 : index
    %c0_84 = arith.constant 0 : index
    %189 = vector.load %arg8[%c8_82, %c0_83, %c0_84] : memref<9x8x8xf32, #tpu.memory_space<vmem>>, vector<1x8x8xf32>
    %190 = vector.shape_cast %189 : vector<1x8x8xf32> to vector<8x8xf32>
    %cst_85 = arith.constant dense<0.000000e+00> : vector<8x1024xf32>
    %191 = tpu.matmul %190, %188, %cst_85 {dimension_numbers = #tpu.dot_dimension_numbers<[1], [0], [0], [1], [0, 0, 1, 1], [], []>} : vector<8x8xf32>, vector<8x1024xf32>, vector<8x1024xf32> -> vector<8x1024xf32>
    %192 = arith.addf %187, %191 : vector<8x1024xf32>
    %c0_86 = arith.constant 0 : index
    %c0_87 = arith.constant 0 : index
    %193 = vector.load %arg9[%c0_86, %c0_87] : memref<8x1xf32, #tpu.memory_space<vmem>>, vector<8x1xf32>
    %194 = vector.broadcast %193 : vector<8x1xf32> to vector<8x1024xf32>
    %195 = arith.addf %192, %194 : vector<8x1024xf32>
    %cst_88 = arith.constant 0.000000e+00 : f32
    %196 = vector.broadcast %cst_88 : f32 to vector<8x1024xf32>
    %197 = arith.maximumf %195, %196 : vector<8x1024xf32>
    %c0_89 = arith.constant 0 : index
    %c0_90 = arith.constant 0 : index
    %c0_91 = arith.constant 0 : index
    %198 = vector.load %arg10[%c0_89, %c0_90, %c0_91] : memref<1x8x1024xf32, #tpu.memory_space<vmem>>, vector<1x8x1024xf32>
    %199 = vector.shape_cast %198 : vector<1x8x1024xf32> to vector<8x1024xf32>
    %200 = vector.shape_cast %197 : vector<8x1024xf32> to vector<1x8x1024xf32>
    tpu.vector_store %arg10[%c0_89, %c0_90, %c0_91], %200 {strides = array<i32>} : memref<1x8x1024xf32, #tpu.memory_space<vmem>>, vector<1x8x1024xf32>,
    return
  }
  func.func @transform_0(%arg0: i32) -> (i32, i32) {
    %c0_i32 = arith.constant 0 : i32
    %c0_i32_0 = arith.constant 0 : i32
    %c0_i32_1 = arith.constant 0 : i32
    return %c0_i32, %c0_i32_0 : i32, i32
  }
  func.func @transform_1(%arg0: i32) -> (i32, i32) {
    %c0_i32 = arith.constant 0 : i32
    %c0_i32_0 = arith.constant 0 : i32
    %c0_i32_1 = arith.constant 0 : i32
    return %c0_i32, %c0_i32_0 : i32, i32
  }
  func.func @transform_2(%arg0: i32) -> (i32, i32) {
    %c0_i32 = arith.constant 0 : i32
    %c0_i32_0 = arith.constant 0 : i32
    %c0_i32_1 = arith.constant 0 : i32
    return %c0_i32, %c0_i32_0 : i32, i32
  }
  func.func @transform_3(%arg0: i32) -> (i32, i32, i32, i32) {
    %c0_i32 = arith.constant 0 : i32
    %c0_i32_0 = arith.constant 0 : i32
    %c0_i32_1 = arith.constant 0 : i32
    %c0_i32_2 = arith.constant 0 : i32
    return %arg0, %c0_i32, %c0_i32_0, %c0_i32_1 : i32, i32, i32, i32
  }
  func.func @transform_4(%arg0: i32) -> (i32, i32, i32) {
    %c0_i32 = arith.constant 0 : i32
    %c0_i32_0 = arith.constant 0 : i32
    %c0_i32_1 = arith.constant 0 : i32
    return %arg0, %c0_i32, %c0_i32_0 : i32, i32, i32
  }
  func.func @transform_5(%arg0: i32) -> (i32, i32, i32) {
    %c0_i32 = arith.constant 0 : i32
    %c0_i32_0 = arith.constant 0 : i32
    %c0_i32_1 = arith.constant 0 : i32
    %c0_i32_2 = arith.constant 0 : i32
    return %c0_i32, %c0_i32_0, %c0_i32_1 : i32, i32, i32
  }
  func.func @transform_6(%arg0: i32) -> (i32, i32) {
    %c0_i32 = arith.constant 0 : i32
    %c0_i32_0 = arith.constant 0 : i32
    %c0_i32_1 = arith.constant 0 : i32
    return %c0_i32, %c0_i32_0 : i32, i32
  }
  func.func @transform_7(%arg0: i32) -> (i32, i32, i32) {
    %c0_i32 = arith.constant 0 : i32
    %c0_i32_0 = arith.constant 0 : i32
    %c0_i32_1 = arith.constant 0 : i32
    %c0_i32_2 = arith.constant 0 : i32
    return %c0_i32, %c0_i32_0, %c0_i32_1 : i32, i32, i32
  }
  func.func @transform_8(%arg0: i32) -> (i32, i32) {
    %c0_i32 = arith.constant 0 : i32
    %c0_i32_0 = arith.constant 0 : i32
    %c0_i32_1 = arith.constant 0 : i32
    return %c0_i32, %c0_i32_0 : i32, i32
  }
  func.func @transform_9(%arg0: i32) -> (i32, i32, i32) {
    %c0_i32 = arith.constant 0 : i32
    %c0_i32_0 = arith.constant 0 : i32
    %c0_i32_1 = arith.constant 0 : i32
    return %arg0, %c0_i32, %c0_i32_0 : i32, i32, i32
  }
}

</mosaic_0001>

<bundles_post_ra>
// kernel: tpu_custom_call.1
= control target key start
LH: loop header
LB: loop body
LE: loop exit
PB: predicated region body
PF: predicated region fallthrough
CT: control target
= control target key end

     0   :  { %14 = vsyncpa [#allocation3], 0  ;;  %s10003_s0 = inlined_call_operand.vmem [shape: f32[32,16], index: 0, kind: input, shape index: {}]   ;;  %s10004_s1 = inlined_call_operand.vmem [shape: f32[32,16], index: 1, kind: input, shape index: {}]   ;;  %s10005_s2 = inlined_call_operand.vmem [shape: f32[2,1280], index: 2, kind: input, shape index: {}]   ;;  %s10006_s3 = inlined_call_operand.vmem [shape: f32[2,4,16,16], index: 3, kind: input, shape index: {}]   ;;  %s10007_s4 = inlined_call_operand.vmem [shape: f32[2,4,1024], index: 4, kind: input, shape index: {}]   ;;  %s10008_s5 = inlined_call_operand.vmem [shape: f32[9,8,8], index: 5, kind: input, shape index: {}]   ;;  %s10009_s6 = inlined_call_operand.vmem [shape: f32[8,1], index: 6, kind: input, shape index: {}]   ;;  %s10010_s7 = inlined_call_operand.vmem [shape: f32[9,8,8], index: 7, kind: input, shape index: {}]   ;;  %s10011_s8 = inlined_call_operand.vmem [shape: f32[8,1], index: 8, kind: input, shape index: {}]   ;;  %s10012_s9 = inlined_call_operand.hbm [shape: f32[2,8,1024], index: 9, kind: output, shape index: {}]  }
   0x1   :  { %16 = vsyncpa [#allocation3 + $0x1], 0  ;;  %s8345_s30 = smov 0   ;;  %s8347_s10 = smov 0  }
   0x2   :  { %s8349_s11 = smov 0   ;;  %s8351_s12 = smov 0  }
   0x3 LB: > { %s8366_s13 = sadd.s32 4294967295, %s8281_s12   ;;  %s7664_s14 = sadd.s32 4294967294, %s8281_s12   ;;  %s8281_s12 = sphi %s8351_s12, %s10023_s12   ;;  %s8277_s11 = sphi %s8349_s11, %s10022_s11   ;;  %s8273_s10 = sphi %s8347_s10, %s10021_s10   ;;  %s8269_s30 = sphi %s8345_s30, %s10020_s30  }
   0x4   : > { %s8370_s15 = sadd.s32 1, %s8281_s12   ;;  %s228_s16 = sadd.s32 1, %s8277_s11 }
   0x5   : > { %s225_s17 = ssub.s32 %s8281_s12, %s8370_s15  ;;  %p238_p0 = scmp.ne.s32.totalorder %s8277_s11, %s8273_s10 }
   0x6   : > { %p226_p1 = scmp.eq.s32.totalorder %s225_s17, 0  ;;  %p239_p2 = scmp.eq.s32.totalorder %s8366_s13, 1 }
   0x7   : > { %p244_p3 = scmp.ne.s32.totalorder %s8273_s10, %s8269_s30  ;;  %p245_p4 = scmp.eq.s32.totalorder %s7664_s14, 1 }
   0x8   : > { %s8381_s18 = scalar_select %p226_p1, %s8277_s11, %s228_s16  }
   0x9   : > { %p8383_p5 = por %p239_p2, %p238_p0  ;;  %p8387_p6 = por %p245_p4, %p244_p3 }
   0xa   : > { %p7667_p7 = scmp.ge.s32.totalorder %s8281_s12, 1  ;;  %p300_p8 = scmp.lt.s32.totalorder %s8281_s12, 3 }
   0xc   : > { %p301_p9 = pnand %p7667_p7, %p300_p8 }
   0xd   : > { %p341_p10 = scmp.lt.s32.totalorder (!%p301_p9), %s8366_s13, 1  ;;  %v359_v0 = vld [vmem:[%s10003_s0] sm:$0xff] (!%p301_p9)  ;;  %vm367_vm0 = vcmask (!%p301_p9), 130048   ;;  %v364_v14 = vld [vmem:[%s10004_s1 + $0x8] sm:$0xff] (!%p301_p9)  ;;  %v361_v16 = vld [vmem:[%s10003_s0 + $0x10] sm:$0xff] (!%p301_p9)  ;;  %v1488_v39 = vlaneseq (!%p301_p9)  ;;  %v10013_v41 = vmov (!%p301_p9), 0.0  }
   0xe   : > { %304 = sbr.rel (%p301_p9) target bundleno = 1552 (0x610), region = 56  ;;  %7880 = vmatprep.mubr.msk.f32.mxu0 (!%p301_p9), %vm367_vm0, %v359_v0  ;;  %7890 = vmatprep.mubr.msk.f32.mxu1 (!%p301_p9), %vm367_vm0, %v359_v0  ;;  %v363_v13 = vld [vmem:[%s10004_s1] sm:$0xff] (!%p301_p9)  ;;  %v360_v15 = vld [vmem:[%s10003_s0 + $0x8] sm:$0xff] (!%p301_p9)  ;;  %vm8421_vm1 = vmpackc.low (!%p301_p9), %vm367_vm0, %vm367_vm0  ;;  %s8284_s16 = smov (!%p301_p9), 32   ;;  %vm1125_vm2 = vcmask (!%p301_p9), 1041409   ;;  %vm1128_vm3 = vcmask (!%p301_p9), 1042434  }
   0xf   : > { %v7988_v17 = vpack.c.bf16 (!%p301_p9), %v364_v14, %v363_v13  ;;  %v362_v19 = vld [vmem:[%s10003_s0 + $0x18] sm:$0xff] (!%p301_p9)  ;;  %v365_v20 = vld [vmem:[%s10004_s1 + $0x10] sm:$0xff] (!%p301_p9)  ;;  %v8495_v40 = vshrl.u32 (!%p301_p9), %v1488_v39, 7  ;;  %1622 = vrot.lane.b32.xlu0 (!%p301_p9), %v10013_v41, %s8284_s16  ;;  %v8502_v42 = vld [vmem:[%s10005_s2] ss:$2 sm:$0xff] (!%p301_p9)  ;;  %s8286_s28 = smov (!%p301_p9), 33  }
  0x10   : > { %v366_v21 = vld [vmem:[%s10004_s1 + $0x18] sm:$0xff] (!%p301_p9)  ;;  %v8507_v43 = vld [vmem:[%s10005_s2 + $0x1] ss:$2 sm:$0xff] (!%p301_p9)  ;;  %v8516_v45 = vld [vmem:[%s10005_s2 + $0x10] ss:$2 sm:$0x3] (!%p301_p9) }
  0x11   : > { %v7994_v22 = vpack.c.bf16 (!%p301_p9), %v366_v21, %v365_v20  ;;  %v8511_v44 = vsub.s32 (!%p301_p9), 0, %v8495_v40  ;;  %v8519_v46 = vsub.s32 (!%p301_p9), 1, %v8495_v40  ;;  %s8287_s29 = smov (!%p301_p9), 127   ;;  %s8288_s14 = smov (!%p301_p9), 1   ;;  %vm1131_vm4 = vcmask (!%p301_p9), 1043459  }
  0x12   : > { %s8289_s17 = smov (!%p301_p9), 64   ;;  %s8290_s21 = smov (!%p301_p9), 96   ;;  %vm1275_vm5 = vcmask (!%p301_p9), 261120   ;;  %vm1277_vm6 = vcmask (!%p301_p9), 523264   ;;  %vm1279_vm7 = vcmask (!%p301_p9), 785408   ;;  %vm1470_vm8 = vcmask (!%p301_p9), 1043456  }
  0x13   : > { %v1491_v47 = vrot.slane (!%p301_p9), %v8502_v42, %v8511_v44  ;;  %v1553_v48 = vrot.slane (!%p301_p9), %v8507_v43, %v8511_v44  ;;  %v1527_v49 = vrot.slane (!%p301_p9), %v8516_v45, %v8519_v46  ;;  %vm1656_vm9 = vcmask (!%p301_p9), 64512   ;;  %s338_s25 = sand.u32 (!%p301_p9), 1, %s8273_s10  }
  0x14   : > { %vm1971_vm10 = vcmask (!%p301_p9), 269312   ;;  %vm2304_vm11 = vcmask (!%p301_p9), 252928   ;;  %vm2636_vm12 = vcmask (!%p301_p9), 7168   ;;  %vm3266_vm13 = vcmask (!%p301_p9), 1039360  }
  0x15   : > { %s8400_s23 = scalar_select %p341_p10, %s8366_s13, 1  ;;  %v1538_v50 = vmul.f32 0.0, %v1491_v47  ;;  %v1600_v51 = vmul.f32 0.0, %v1553_v48  ;;  %v8530_v52 = vmul.f32 0.0, %v1527_v49  ;;  %vm3599_vm14 = vcmask 793600  }
  0x16   : > { %vm4262_vm15 = vcmask 777216  }
  0x17   : > { %s7817_s24 = sshll.u32 %s8400_s23, 6  ;;  %1953 = vrot.lane.b32.xlu1 %v1600_v51, %s8286_s28  ;;  %s7818_s22 = sshll.u32 %s8400_s23, 5 }
  0x18   : > { %s345_s27 = scalar_lea.vmem %s10006_s3, %s7817_s24  ;;  %s8939_s26 = scalar_lea.vmem %s10007_s4, %s7818_s22 }
  0x19   : > { %v351_v1 = vld [vmem:[%s345_s27] sm:$0xff]  ;;  %v352_v2 = vld [vmem:[%s345_s27 + $0x8] sm:$0xff]  ;;  %v353_v3 = vld [vmem:[%s345_s27 + $0x10] sm:$0xff]  ;;  %s8291_s23 = smov 97   ;;  %s8292_s24 = smov 95  }
  0x1a   : > { %v7972_v4 = vpack.c.bf16 %v352_v2, %v351_v1  ;;  %v354_v5 = vld [vmem:[%s345_s27 + $0x18] sm:$0xff]  ;;  %v355_v6 = vld [vmem:[%s345_s27 + $0x20] sm:$0xff]  ;;  %v356_v7 = vld [vmem:[%s345_s27 + $0x28] sm:$0xff]  ;;  %s7819_s22 = sshll.u32 %s8366_s13, 10  ;;  %s7579_s13 = scalar_lea.sflag [#allocation3], %s338_s25 }
  0x1b   : > { %v7976_v8 = vpack.c.bf16 %v354_v5, %v353_v3  ;;  %v7980_v9 = vpack.c.bf16 %v356_v7, %v355_v6  ;;  %v357_v10 = vld [vmem:[%s345_s27 + $0x30] sm:$0xff]  ;;  %v358_v11 = vld [vmem:[%s345_s27 + $0x38] sm:$0xff]  ;;  %s8285_s27 = smov 31   ;;  %2618 = vrot.lane.b32.xlu1 %v1600_v51, %s8288_s14 }
  0x1c   : > { %7973 = vmatprep.subr.bf16.mxu0 %v7972_v4  ;;  %v7984_v12 = vpack.c.bf16 %v358_v11, %v357_v10  ;;  %2286 = vrot.lane.b32.xlu0 %v1538_v50, %s8285_s27 }
  0x1d   : > { %7977 = vmatprep.subr.bf16.mxu1 %v7976_v8  ;;  %7975 = vmatpush3.bf16.msra.mxu0 %v7972_v4 }
  0x1e   : > { %7979 = vmatpush3.bf16.msra.mxu1 %v7976_v8  ;;  %7981 = vmatprep.subr.bf16.mxu0 %v7980_v9 }
  0x1f   : > { %7985 = vmatprep.subr.bf16.mxu1 %v7984_v12 }
  0x20   : > { %7881 = vmatmul.mubr.msk.f32.vlgmr.msra.gmra.mrb[0].mxu0 %vm367_vm0, %v360_v15  ;;  %3264 = vrot.lane.b32.xlu0 %v8530_v52, %s8287_s29 }
  0x21   : > { %7891 = vmatmul.mubr.msk.f32.vlgmr.msra.gmra.mrb[0].mxu1 %vm367_vm0, %v360_v15  ;;  %7883 = vmatprep.mubr.msk.f32.mxu0 %vm367_vm0, %v361_v16 }
  0x22   : > { %7893 = vmatprep.mubr.msk.f32.mxu1 %vm367_vm0, %v361_v16  ;;  %7983 = vmatpush3.bf16.msra.mxu0 %v7980_v9 }
  0x23   : > { %7987 = vmatpush3.bf16.msra.mxu1 %v7984_v12  ;;  %7990 = vmatprep.subr.msk.bf16.mxu0 %vm8421_vm1, %v7988_v17 }
  0x24   : > { %7884 = vmatmul.mubr.msk.f32.gmra.mrb[2].mxu0 %vm367_vm0, %v362_v19  ;;  %8002 = vmatprep.subr.msk.bf16.mxu1 %vm8421_vm1, %v7988_v17 }
  0x25   : > { %7894 = vmatmul.mubr.msk.f32.gmra.mrb[2].mxu1 %vm367_vm0, %v362_v19  ;;  %7900 = vmatprep.mubr.msk.f32.mxu0 %vm367_vm0, %v359_v0 }
  0x26   : > { %7910 = vmatprep.mubr.msk.f32.mxu1 %vm367_vm0, %v359_v0 }
  0x28   : > { %7901 = vmatmul.mubr.msk.f32.vlgmr.msra.gmra.mrb[4].mxu0 %vm367_vm0, %v360_v15 }
  0x29   : > { %7911 = vmatmul.mubr.msk.f32.vlgmr.msra.gmra.mrb[4].mxu1 %vm367_vm0, %v360_v15  ;;  %7903 = vmatprep.mubr.msk.f32.mxu0 %vm367_vm0, %v361_v16 }
  0x2a   : > { %7913 = vmatprep.mubr.msk.f32.mxu1 %vm367_vm0, %v361_v16 }
  0x2b   : > { %7993 = vmatpush3.bf16.xpose.msk.msra.mxu0 %vm8421_vm1, %v7988_v17 }
  0x2c   : > { %7904 = vmatmul.mubr.msk.f32.gmra.mrb[6].mxu0 %vm367_vm0, %v362_v19  ;;  %8005 = vmatpush3.bf16.xpose.msk.msra.mxu1 %vm8421_vm1, %v7988_v17 }
  0x2d   : > { %7914 = vmatmul.mubr.msk.f32.gmra.mrb[6].mxu1 %vm367_vm0, %v362_v19  ;;  %7996 = vmatprep.subr.msk.bf16.mxu0 %vm8421_vm1, %v7994_v22 }
  0x2e   : > { %8008 = vmatprep.subr.msk.bf16.mxu1 %vm8421_vm1, %v7994_v22 }
  0x33   : > { %7999 = vmatpush3.bf16.xpose.msk.msra.mxu0 %vm8421_vm1, %v7994_v22 }
  0x34   : > { %8011 = vmatpush3.bf16.xpose.msk.msra.mxu1 %vm8421_vm1, %v7994_v22  ;;  %8014 = vmatprep.subr.msk.bf16.mxu0 %vm8421_vm1, %v7988_v17 }
  0x35   : > { %8026 = vmatprep.subr.msk.bf16.mxu1 %vm8421_vm1, %v7988_v17 }
  0xf3   : > { %v7882_v23 = vpop.f32.mrb[0].mxu0 }
  0xf4   : > { %v7892_v24 = vpop.f32.mrb[0].mxu1  ;;  %v446_v25 = vpop.f32.mrb[1].mxu0 }
  0xf5   : > { %v531_v26 = vpop.f32.mrb[1].mxu1  ;;  %7924 = vmatprep.mubr.msk.f32.mxu0 %vm367_vm0, %v446_v25 }
  0xf6   : > { %7938 = vmatprep.mubr.msk.f32.mxu1 %vm367_vm0, %v531_v26  ;;  %7925 = vmatmul.mubr.msk.f32.vlgmr.msra.gmra.mrb[8].mxu0 %vm367_vm0, %v7882_v23 }
  0xf7   : > { %7939 = vmatmul.mubr.msk.f32.vlgmr.msra.gmra.mrb[8].mxu1 %vm367_vm0, %v7892_v24  ;;  %8017 = vmatpush3.bf16.xpose.msk.msra.mxu0 %vm8421_vm1, %v7988_v17  ;;  %v7885_v27 = vpop.f32.mrb[2].mxu0 }
  0xf8   : > { %8029 = vmatpush3.bf16.xpose.msk.msra.mxu1 %vm8421_vm1, %v7988_v17  ;;  %v7895_v28 = vpop.f32.mrb[2].mxu1  ;;  %v456_v29 = vpop.f32.mrb[3].mxu0  ;;  %8020 = vmatprep.subr.msk.bf16.mxu0 %vm8421_vm1, %v7994_v22 }
  0xf9   : > { %v541_v30 = vpop.f32.mrb[3].mxu1  ;;  %7927 = vmatprep.mubr.msk.f32.mxu0 %vm367_vm0, %v456_v29  ;;  %8032 = vmatprep.subr.msk.bf16.mxu1 %vm8421_vm1, %v7994_v22 }
  0xfa   : > { %7941 = vmatprep.mubr.msk.f32.mxu1 %vm367_vm0, %v541_v30  ;;  %7928 = vmatmul.mubr.msk.f32.gmra.mrb[10].mxu0 %vm367_vm0, %v7885_v27 }
  0xfb   : > { %7942 = vmatmul.mubr.msk.f32.gmra.mrb[10].mxu1 %vm367_vm0, %v7895_v28  ;;  %v7902_v31 = vpop.f32.mrb[4].mxu0 }
  0xfc   : > { %v616_v32 = vpop.f32.mrb[5].mxu0  ;;  %v7912_v33 = vpop.f32.mrb[4].mxu1 }
  0xfd   : > { %v701_v34 = vpop.f32.mrb[5].mxu1  ;;  %7952 = vmatprep.mubr.msk.f32.mxu0 %vm367_vm0, %v616_v32 }
  0xfe   : > { %7966 = vmatprep.mubr.msk.f32.mxu1 %vm367_vm0, %v701_v34 }
  0xff   : > { %8023 = vmatpush3.bf16.xpose.msk.msra.mxu0 %vm8421_vm1, %v7994_v22  ;;  %v7905_v35 = vpop.f32.mrb[6].mxu0 }
 0x100   : > { %8035 = vmatpush3.bf16.xpose.msk.msra.mxu1 %vm8421_vm1, %v7994_v22  ;;  %v7915_v36 = vpop.f32.mrb[6].mxu1  ;;  %v626_v37 = vpop.f32.mrb[7].mxu0 }
 0x101   : > { %v711_v38 = vpop.f32.mrb[7].mxu1 }
 0x106   : > { %7953 = vmatmul.mubr.msk.f32.vlgmr.msra.gmra.mrb[12].mxu0 %vm367_vm0, %v7902_v31 }
 0x107   : > { %7967 = vmatmul.mubr.msk.f32.vlgmr.msra.gmra.mrb[12].mxu1 %vm367_vm0, %v7912_v33  ;;  %7955 = vmatprep.mubr.msk.f32.mxu0 %vm367_vm0, %v626_v37 }
 0x108   : > { %7969 = vmatprep.mubr.msk.f32.mxu1 %vm367_vm0, %v711_v38 }
 0x10a   : > { %7956 = vmatmul.mubr.msk.f32.gmra.mrb[14].mxu0 %vm367_vm0, %v7905_v35 }
 0x10b   : > { %7970 = vmatmul.mubr.msk.f32.gmra.mrb[14].mxu1 %vm367_vm0, %v7915_v36  ;;  %1724 = vmatprep.mubr.f32.mxu0 %v10013_v41 }
 0x10c   : > { %1795 = vmatprep.mubr.f32.mxu1 %v10013_v41 }
 0x1c9   : > { %v8535_v53 = vpop.f32.mrb[8].mxu0 }
 0x1ca   : > { %v8537_v54 = vpop.f32.mrb[8].mxu1  ;;  %v8539_v55 = vpop.f32.mrb[9].mxu0  ;;  %v1219_v56 = vrot.slane %v8535_v53, 2  ;;  %v1210_v57 = vrot.slane %v8535_v53, 1  ;;  %v1245_v58 = vrot.slane %v8535_v53, 5  ;;  %v1228_v59 = vrot.slane %v8535_v53, 3 }
 0x1cb   : > { %v8545_v60 = vpop.f32.mrb[9].mxu1  ;;  %v1220_v61 = vrot.slane %v8537_v54, 1  ;;  %v1143_v62 = vrot.slane %v8539_v55, 2  ;;  %v1246_v63 = vrot.slane %v8537_v54, 4  ;;  %v1229_v0 = vrot.slane %v8537_v54, 2 }
 0x1cc   : > { %v8553_v1 = vsel %vm1125_vm2, %v8537_v54, %v1210_v57  ;;  %v1144_v2 = vrot.slane %v8545_v60, 1  ;;  %v1255_v3 = vrot.slane %v8535_v53, 6  ;;  %v1256_v4 = vrot.slane %v8537_v54, 5 }
 0x1cd   : > { %v8558_v5 = vpop.f32.mrb[10].mxu0  ;;  %v1221_v6 = vsel %vm1125_vm2, %v1220_v61, %v1219_v56  ;;  %v8562_v7 = vsel %vm1125_vm2, %v1246_v63, %v1245_v58  ;;  %v8565_v8 = vsel %vm1125_vm2, %v1229_v0, %v1228_v59  ;;  %v1134_v9 = vrot.slane %v8539_v55, 1 }
 0x1ce   : > { %v8568_v10 = vpop.f32.mrb[10].mxu1  ;;  %v8570_v11 = vpop.f32.mrb[11].mxu0  ;;  %v1145_v12 = vsel %vm1125_vm2, %v1144_v2, %v1143_v62  ;;  %v8574_v13 = vsel %vm1125_vm2, %v1256_v4, %v1255_v3  ;;  %v1265_v14 = vrot.slane %v8535_v53, 7  ;;  %v1266_v15 = vrot.slane %v8537_v54, 6 }
 0x1cf   : > { %v8578_v16 = vpop.f32.mrb[11].mxu1  ;;  %v8582_v17 = vsel %vm1125_vm2, %v8545_v60, %v1134_v9  ;;  %v1169_v18 = vrot.slane %v8539_v55, 5  ;;  %v1170_v19 = vrot.slane %v8545_v60, 4  ;;  %v1179_v20 = vrot.slane %v8539_v55, 6 }
 0x1d0   : > { %v8588_v21 = vsel %vm1125_vm2, %v1266_v15, %v1265_v14  ;;  %v1180_v22 = vrot.slane %v8545_v60, 5  ;;  %v1152_v23 = vrot.slane %v8539_v55, 3  ;;  %v1153_v24 = vrot.slane %v8545_v60, 2 }
 0x1d1   : > { %v8594_v25 = vsel %vm1125_vm2, %v1170_v19, %v1169_v18  ;;  %v1189_v26 = vrot.slane %v8539_v55, 7  ;;  %v1190_v27 = vrot.slane %v8545_v60, 6  ;;  %v1386_v28 = vrot.slane %v8558_v5, 2 }
 0x1d2   : > { %v8600_v29 = vsel %vm1125_vm2, %v1180_v22, %v1179_v20  ;;  %v8603_v30 = vsel %vm1125_vm2, %v1153_v24, %v1152_v23  ;;  %v1387_v31 = vrot.slane %v8568_v10, 1  ;;  %v1412_v32 = vrot.slane %v8558_v5, 5 }
 0x1d3   : > { %v8608_v33 = vsel %vm1125_vm2, %v1190_v27, %v1189_v26  ;;  %v1413_v34 = vrot.slane %v8568_v10, 4  ;;  %v1377_v35 = vrot.slane %v8558_v5, 1  ;;  %v1422_v36 = vrot.slane %v8558_v5, 6 }
 0x1d4   : > { %v8614_v37 = vsel %vm1125_vm2, %v1387_v31, %v1386_v28  ;;  %v1423_v38 = vrot.slane %v8568_v10, 5  ;;  %v1310_v39 = vrot.slane %v8570_v11, 2  ;;  %v1311_v47 = vrot.slane %v8578_v16, 1 }
 0x1d5   : > { %v8620_v48 = vsel %vm1125_vm2, %v1413_v34, %v1412_v32  ;;  %v8624_v49 = vsel %vm1125_vm2, %v8568_v10, %v1377_v35  ;;  %v1432_v50 = vrot.slane %v8558_v5, 7  ;;  %v1433_v51 = vrot.slane %v8568_v10, 6 }
 0x1d6   : > { %v8629_v56 = vsel %vm1125_vm2, %v1423_v38, %v1422_v36  ;;  %v8632_v57 = vsel %vm1125_vm2, %v1311_v47, %v1310_v39  ;;  %v1395_v58 = vrot.slane %v8558_v5, 3  ;;  %v1396_v59 = vrot.slane %v8568_v10, 2 }
 0x1d7   : > { %v8637_v61 = vsel %vm1125_vm2, %v1433_v51, %v1432_v50  ;;  %v1336_v62 = vrot.slane %v8570_v11, 5  ;;  %v1337_v63 = vrot.slane %v8578_v16, 4  ;;  %v1301_v0 = vrot.slane %v8570_v11, 1 }
 0x1d8   : > { %v8643_v2 = vsel %vm1125_vm2, %v1396_v59, %v1395_v58  ;;  %v1346_v3 = vrot.slane %v8570_v11, 6  ;;  %v1347_v4 = vrot.slane %v8578_v16, 5  ;;  %v1319_v9 = vrot.slane %v8570_v11, 3 }
 0x1d9   : > { %v8648_v14 = vpop.f32.mrb[12].mxu0  ;;  %v8651_v15 = vsel %vm1125_vm2, %v1337_v63, %v1336_v62  ;;  %v8655_v18 = vsel %vm1125_vm2, %v8578_v16, %v1301_v0  ;;  %v1320_v19 = vrot.slane %v8578_v16, 2  ;;  %v1356_v20 = vrot.slane %v8570_v11, 7 }
 0x1da   : > { %v8659_v22 = vpop.f32.mrb[12].mxu1  ;;  %v8661_v23 = vpop.f32.mrb[13].mxu0  ;;  %v1222_v24 = vsel %vm1128_vm3, %v8648_v14, %v1221_v6  ;;  %v1212_v26 = vrot.slane %v8648_v14, 7  ;;  %v1248_v27 = vrot.slane %v8648_v14, 3  ;;  %v1231_v28 = vrot.slane %v8648_v14, 1 }
 0x1db   : > { %v8668_v31 = vpop.f32.mrb[13].mxu1  ;;  %v1223_v32 = vrot.slane %v8659_v22, 7  ;;  %v1214_v34 = vrot.slane %v8659_v22, 6  ;;  %v1146_v35 = vsel %vm1128_vm3, %v8661_v23, %v1145_v12  ;;  %v1250_v36 = vrot.slane %v8659_v22, 2 }
 0x1dc   : > { %v1213_v6 = vsel %vm1128_vm3, %v1212_v26, %v8553_v1  ;;  %v1147_v38 = vrot.slane %v8668_v31, 7  ;;  %v1249_v39 = vsel %vm1128_vm3, %v1248_v27, %v8562_v7  ;;  %v1232_v47 = vsel %vm1128_vm3, %v1231_v28, %v8565_v8 }
 0x1dd   : > { %v1224_v50 = vsel %vm1131_vm4, %v1223_v32, %v1222_v24  ;;  %v8683_v51 = vpop.f32.mrb[14].mxu0  ;;  %v1215_v58 = vsel %vm1131_vm4, %v1214_v34, %v1213_v6  ;;  %v1251_v12 = vsel %vm1131_vm4, %v1250_v36, %v1249_v39  ;;  %v1233_v59 = vsel %vm1131_vm4, %v8659_v22, %v1232_v47 }
 0x1de   : > { %v8689_v1 = vpop.f32.mrb[14].mxu1  ;;  %1225 = vrot.lane.b32.xlu0 %v1224_v50, %s8289_s17  ;;  %1216 = vrot.lane.b32.xlu1 %v1215_v58, %s8284_s16  ;;  %v8693_v7 = vpop.f32.mrb[15].mxu0  ;;  %v1148_v8 = vsel %vm1131_vm4, %v1147_v38, %v1146_v35  ;;  %v1258_v62 = vrot.slane %v8648_v14, 4  ;;  %v1260_v63 = vrot.slane %v8659_v22, 3  ;;  %v1136_v0 = vrot.slane %v8661_v23, 7 }
 0x1df   : > { %v8699_v24 = vpop.f32.mrb[15].mxu1  ;;  %v1138_v26 = vrot.slane %v8668_v31, 6  ;;  %v1268_v27 = vrot.slane %v8648_v14, 5  ;;  %v1270_v28 = vrot.slane %v8659_v22, 4  ;;  %v1172_v32 = vrot.slane %v8661_v23, 3 }
 0x1e0   : > { %v1259_v34 = vsel %vm1128_vm3, %v1258_v62, %v8574_v13  ;;  %v1137_v35 = vsel %vm1128_vm3, %v1136_v0, %v8582_v17  ;;  %v1174_v36 = vrot.slane %v8668_v31, 2  ;;  %v1182_v6 = vrot.slane %v8661_v23, 4 }
 0x1e1   : > { %v1261_v38 = vsel %vm1131_vm4, %v1260_v63, %v1259_v34  ;;  %v1139_v39 = vsel %vm1131_vm4, %v1138_v26, %v1137_v35  ;;  %v1269_v47 = vsel %vm1128_vm3, %v1268_v27, %v8588_v21  ;;  %v1173_v50 = vsel %vm1128_vm3, %v1172_v32, %v8594_v25 }
 0x1e2   : > { %1149 = vrot.lane.b32.xlu0 %v1148_v8, %s8289_s17  ;;  %1252 = vrot.lane.b32.xlu1 %v1251_v12, %s8284_s16  ;;  %v1271_v13 = vsel %vm1131_vm4, %v1270_v28, %v1269_v47  ;;  %v1175_v17 = vsel %vm1131_vm4, %v1174_v36, %v1173_v50  ;;  %v1183_v58 = vsel %vm1128_vm3, %v1182_v6, %v8600_v29  ;;  %v1184_v62 = vrot.slane %v8668_v31, 3 }
 0x1e3   : > { %v1155_v63 = vrot.slane %v8661_v23, 1  ;;  %v1192_v21 = vrot.slane %v8661_v23, 5  ;;  %v1194_v0 = vrot.slane %v8668_v31, 4  ;;  %v1389_v25 = vsel %vm1128_vm3, %v8683_v51, %v8614_v37 }
 0x1e4   : > { %v1185_v12 = vsel %vm1131_vm4, %v1184_v62, %v1183_v58  ;;  %v1390_v8 = vrot.slane %v8689_v1, 7  ;;  %v1415_v26 = vrot.slane %v8683_v51, 3  ;;  %v1417_v29 = vrot.slane %v8689_v1, 2 }
 0x1e5   : > { %v1156_v27 = vsel %vm1128_vm3, %v1155_v63, %v8603_v30  ;;  %v1193_v28 = vsel %vm1128_vm3, %v1192_v21, %v8608_v33  ;;  %v1379_v32 = vrot.slane %v8683_v51, 7  ;;  %v1381_v34 = vrot.slane %v8689_v1, 6 }
 0x1e6   : > { %1234 = vrot.lane.b32.xlu0 %v1233_v59, %s8290_s21  ;;  %1262 = vrot.lane.b32.xlu1 %v1261_v38, %s8289_s17  ;;  %v1157_v37 = vsel %vm1131_vm4, %v8668_v31, %v1156_v27  ;;  %v1195_v35 = vsel %vm1131_vm4, %v1194_v0, %v1193_v28  ;;  %v1391_v36 = vsel %vm1131_vm4, %v1390_v8, %v1389_v25  ;;  %v1425_v30 = vrot.slane %v8683_v51, 4 }
 0x1e7   : > { %v1416_v33 = vsel %vm1128_vm3, %v1415_v26, %v8620_v48  ;;  %v1380_v6 = vsel %vm1128_vm3, %v1379_v32, %v8624_v49  ;;  %v1427_v47 = vrot.slane %v8689_v1, 3  ;;  %v1313_v59 = vsel %vm1128_vm3, %v8693_v7, %v8632_v57 }
 0x1e8   : > { %v1418_v38 = vsel %vm1131_vm4, %v1417_v29, %v1416_v33  ;;  %v8757_v50 = vsel %vm1131_vm4, %v1381_v34, %v1380_v6  ;;  %v1426_v58 = vsel %vm1128_vm3, %v1425_v30, %v8629_v56  ;;  %v1314_v62 = vrot.slane %v8699_v24, 7 }
 0x1e9   : > { %v8763_v48 = vsel %vm1131_vm4, %v1427_v47, %v1426_v58  ;;  %v1435_v49 = vrot.slane %v8683_v51, 5  ;;  %v1437_v63 = vrot.slane %v8689_v1, 4  ;;  %v1398_v21 = vrot.slane %v8683_v51, 1 }
 0x1ea   : > { %1140 = vrot.lane.b32.xlu0 %v1139_v39, %s8284_s16  ;;  %1272 = vrot.lane.b32.xlu1 %v1271_v13, %s8290_s21  ;;  %v8771_v57 = vsel %vm1131_vm4, %v1314_v62, %v1313_v59  ;;  %v1339_v56 = vrot.slane %v8693_v7, 3  ;;  %v1341_v0 = vrot.slane %v8699_v24, 2  ;;  %v1303_v25 = vrot.slane %v8693_v7, 7 }
 0x1eb   : > { %v1436_v8 = vsel %vm1128_vm3, %v1435_v49, %v8637_v61  ;;  %v1399_v26 = vsel %vm1128_vm3, %v1398_v21, %v8643_v2  ;;  %v1305_v29 = vrot.slane %v8699_v24, 6  ;;  %v1348_v39 = vsel %vm1125_vm2, %v1347_v4, %v1346_v3 }
 0x1ec   : > { %v8787_v13 = vsel %vm1131_vm4, %v1437_v63, %v1436_v8  ;;  %v8791_v27 = vsel %vm1131_vm4, %v8689_v1, %v1399_v26  ;;  %v1340_v61 = vsel %vm1128_vm3, %v1339_v56, %v8651_v15  ;;  %v1304_v2 = vsel %vm1128_vm3, %v1303_v25, %v8655_v18 }
 0x1ed   : > { %v8798_v28 = vsel %vm1131_vm4, %v1341_v0, %v1340_v61  ;;  %v8801_v32 = vsel %vm1131_vm4, %v1305_v29, %v1304_v2  ;;  %v1349_v3 = vrot.slane %v8693_v7, 4  ;;  %v1351_v4 = vrot.slane %v8699_v24, 3 }
 0x1ee   : > { %1176 = vrot.lane.b32.xlu0 %v1175_v17, %s8284_s16  ;;  %1186 = vrot.lane.b32.xlu1 %v1185_v12, %s8289_s17  ;;  %v1321_v15 = vsel %vm1125_vm2, %v1320_v19, %v1319_v9  ;;  %v1322_v18 = vrot.slane %v8693_v7, 1  ;;  %v1357_v34 = vrot.slane %v8578_v16, 6  ;;  %v1359_v30 = vrot.slane %v8693_v7, 5 }
 0x1ef   : > { %v1350_v33 = vsel %vm1128_vm3, %v1349_v3, %v1348_v39  ;;  %v1361_v6 = vrot.slane %v8699_v24, 4  ;;  %v1203_v17 = vrot.slane %v8537_v54, 7  ;;  %v1207_v19 = vrot.slane %v8659_v22, 5 }
 0x1f0   : > { %v8819_v12 = vsel %vm1131_vm4, %v1351_v4, %v1350_v33  ;;  %v1323_v47 = vsel %vm1128_vm3, %v1322_v18, %v1321_v15  ;;  %v1358_v9 = vsel %vm1125_vm2, %v1357_v34, %v1356_v20  ;;  %v1205_v49 = vrot.slane %v8648_v14, 6 }
 0x1f1   : > { %v8828_v59 = vsel %vm1131_vm4, %v8699_v24, %v1323_v47  ;;  %v1360_v58 = vsel %vm1128_vm3, %v1359_v30, %v1358_v9  ;;  %v1204_v62 = vsel %vm1125_vm2, %v1203_v17, %v8535_v53  ;;  %v1237_v20 = vrot.slane %v8535_v53, 4 }
 0x1f2   : > { %1158 = vrot.lane.b32.xlu0 %v1157_v37, %s8290_s21  ;;  %1196 = vrot.lane.b32.xlu1 %v1195_v35, %s8290_s21  ;;  %v1362_v63 = vsel %vm1131_vm4, %v1361_v6, %v1360_v58  ;;  %v1238_v21 = vrot.slane %v8537_v54, 3  ;;  %v1240_v56 = vrot.slane %v8648_v14, 2  ;;  %v1206_v0 = vsel %vm1128_vm3, %v1205_v49, %v1204_v62 }
 0x1f3   : > { %v1242_v25 = vrot.slane %v8659_v22, 1  ;;  %v8843_v8 = vsel %vm1131_vm4, %v1207_v19, %v1206_v0  ;;  %v1124_v35 = vrot.slane %v8545_v60, 7  ;;  %v1130_v29 = vrot.slane %v8668_v31, 5 }
 0x1f4   : > { %v1239_v26 = vsel %vm1125_vm2, %v1238_v21, %v1237_v20  ;;  %v1127_v53 = vrot.slane %v8661_v23, 6  ;;  %v1161_v14 = vrot.slane %v8539_v55, 4  ;;  %v1162_v22 = vrot.slane %v8545_v60, 3 }
 0x1f5   : > { %v1241_v37 = vsel %vm1128_vm3, %v1240_v56, %v1239_v26  ;;  %v1164_v39 = vrot.slane %v8661_v23, 2  ;;  %v1126_v61 = vsel %vm1125_vm2, %v1124_v35, %v8539_v55  ;;  %v1166_v2 = vrot.slane %v8668_v31, 1 }
 0x1f6   : > { %1392 = vrot.lane.b32.xlu0 %v1391_v36, %s8289_s17  ;;  %1419 = vrot.lane.b32.xlu1 %v1418_v38, %s8284_s16  ;;  %v8853_v54 = vsel %vm1131_vm4, %v1242_v25, %v1241_v37  ;;  %v1404_v3 = vrot.slane %v8558_v5, 4  ;;  %v1129_v36 = vsel %vm1128_vm3, %v1127_v53, %v1126_v61  ;;  %v1163_v38 = vsel %vm1125_vm2, %v1162_v22, %v1161_v14 }
 0x1f7   : > { %v1405_v4 = vrot.slane %v8568_v10, 3  ;;  %v1409_v15 = vrot.slane %v8689_v1, 1  ;;  %v8867_v18 = vsel %vm1131_vm4, %v1130_v29, %v1129_v36  ;;  %v1165_v60 = vsel %vm1128_vm3, %v1164_v39, %v1163_v38 }
 0x1f8   : > { %v1407_v23 = vrot.slane %v8683_v51, 2  ;;  %v8876_v55 = vsel %vm1131_vm4, %v1166_v2, %v1165_v60  ;;  %v1370_v34 = vrot.slane %v8568_v10, 7  ;;  %v1374_v30 = vrot.slane %v8689_v1, 5  ;;  %v1454_v2 = vld [vmem:[%s8939_s26] sm:$0xff] }
 0x1f9   : > { %v1406_v31 = vsel %vm1125_vm2, %v1405_v4, %v1404_v3  ;;  %v1372_v6 = vrot.slane %v8683_v51, 6  ;;  %v1328_v47 = vrot.slane %v8570_v11, 4  ;;  %v1329_v51 = vrot.slane %v8578_v16, 3 }
 0x1fa   : > { %1383 = vrot.lane.b32.xlu0 %v8757_v50, %s8284_s16  ;;  %1429 = vrot.lane.b32.xlu1 %v8763_v48, %s8289_s17  ;;  %v1408_v33 = vsel %vm1128_vm3, %v1407_v23, %v1406_v31  ;;  %v1371_v50 = vsel %vm1125_vm2, %v1370_v34, %v8558_v5  ;;  %v1333_v1 = vrot.slane %v8699_v24, 1  ;;  %v1331_v9 = vrot.slane %v8693_v7, 2 }
 0x1fb   : > { %v8884_v17 = vsel %vm1131_vm4, %v1409_v15, %v1408_v33  ;;  %v1373_v48 = vsel %vm1128_vm3, %v1372_v6, %v1371_v50  ;;  %v1294_v5 = vrot.slane %v8578_v16, 7  ;;  %v1298_v19 = vrot.slane %v8699_v24, 5 }
 0x1fc   : > { %v8895_v10 = vsel %vm1131_vm4, %v1374_v30, %v1373_v48  ;;  %v1296_v58 = vrot.slane %v8693_v7, 6  ;;  %v1506_v4 = vsub.s32 4, %v8495_v40  ;;  %v1502_v15 = vsub.s32 3, %v8495_v40 }
 0x1fd   : > { %v1462_v60 = vcombine.low %v1454_v2, %v1454_v2 }
 0x1fe   : > { %1316 = vrot.lane.b32.xlu0 %v8771_v57, %s8289_s17  ;;  %1439 = vrot.lane.b32.xlu1 %v8787_v13, %s8290_s21  ;;  %v1330_v57 = vsel %vm1125_vm2, %v1329_v51, %v1328_v47  ;;  %v1295_v13 = vsel %vm1125_vm2, %v1294_v5, %v8570_v11  ;;  %v8925_v11 = vpop.permute.xlu0 %1622 }
 0x1ff   : > { %v1332_v62 = vsel %vm1128_vm3, %v1331_v9, %v1330_v57  ;;  %v1297_v24 = vsel %vm1128_vm3, %v1296_v58, %v1295_v13  ;;  %v8995_v9 = vrot.slane %v8502_v42, %v1506_v4 }
 0x200   : > { %v8912_v16 = vsel %vm1131_vm4, %v1333_v1, %v1332_v62  ;;  %v8916_v7 = vsel %vm1131_vm4, %v1298_v19, %v1297_v24  ;;  %v8992_v1 = vrot.slane %v8502_v42, %v1502_v15  ;;  %v1498_v62 = vsub.s32 2, %v8495_v40 }
 0x202   : > { %1401 = vrot.lane.b32.xlu0 %v8791_v27, %s8290_s21  ;;  %1343 = vrot.lane.b32.xlu1 %v8798_v28, %s8284_s16  ;;  %v8927_v27 = vpop.permute.xlu0 %2286  ;;  %v8929_v28 = vpop.permute.xlu1 %1953 }
 0x206   : > { %1307 = vrot.lane.b32.xlu0 %v8801_v32, %s8284_s16  ;;  %1353 = vrot.lane.b32.xlu1 %v8819_v12, %s8289_s17  ;;  %v8931_v49 = vpop.permute.xlu0 %3264  ;;  %v8933_v20 = vpop.permute.xlu1 %2618  ;;  %v1455_v12 = vld [vmem:[%s8939_s26 + $0x8] sm:$0xff] }
 0x207   : > { %v1463_v0 = vcombine.low %v1455_v12, %v1455_v12 }
 0x20a   : > { %1325 = vrot.lane.b32.xlu0 %v8828_v59, %s8290_s21  ;;  %1363 = vrot.lane.b32.xlu1 %v1362_v63, %s8290_s21 }
 0x250   : > { %v1226_v32 = vpop.permute.xlu0 %1225  ;;  %v1217_v21 = vpop.permute.xlu1 %1216 }
 0x251   : > { %v1284_v56 = vsel %vm1275_vm5, %v8843_v8, %v1217_v21  ;;  %v9023_v21 = vrot.slane %v8507_v43, %v8519_v46 }
 0x252   : > { %v1285_v25 = vsel %vm1277_vm6, %v1284_v56, %v1226_v32  ;;  %v9019_v32 = vrot.slane %v8507_v43, %v1498_v62  ;;  %v9036_v56 = vrot.slane %v8502_v42, %v1498_v62 }
 0x254   : > { %v1150_v59 = vpop.permute.xlu0 %1149  ;;  %v1253_v63 = vpop.permute.xlu1 %1252 }
 0x255   : > { %v1287_v53 = vsel %vm1275_vm5, %v8853_v54, %v1253_v63  ;;  %v9033_v63 = vrot.slane %v8502_v42, %v8519_v46 }
 0x258   : > { %v1235_v26 = vpop.permute.xlu0 %1234  ;;  %v1263_v37 = vpop.permute.xlu1 %1262 }
 0x259   : > { %v1286_v35 = vsel %vm1279_vm7, %v1285_v25, %v1235_v26  ;;  %v1288_v8 = vsel %vm1277_vm6, %v1287_v53, %v1263_v37 }
 0x25a   : > { %v8947_v29 = vsel %vm1470_vm8, %v1286_v35, %v1463_v0 }
 0x25b   : > { %1628 = vrot.lane.b32.xlu0 %v8947_v29, %s8284_s16  ;;  %v9001_v5 = vmul.f32 %v8992_v1, %v8947_v29 }
 0x25c   : > { %v1141_v14 = vpop.permute.xlu0 %1140  ;;  %v1273_v22 = vpop.permute.xlu1 %1272 }
 0x25d   : > { %v1289_v39 = vsel %vm1279_vm7, %v1288_v8, %v1273_v22  ;;  %v1276_v54 = vsel %vm1275_vm5, %v8867_v18, %v1141_v14  ;;  %v8972_v18 = vrot.slane %v8507_v43, %v1506_v4 }
 0x25e   : > { %v8956_v61 = vsel %vm1470_vm8, %v1289_v39, %v1455_v12  ;;  %v1278_v34 = vsel %vm1277_vm6, %v1276_v54, %v1150_v59  ;;  %v1457_v39 = vld [vmem:[%s8939_s26 + $0x18] sm:$0xff] }
 0x25f   : > { %1630 = vrot.lane.b32.xlu1 %v8956_v61, %s8284_s16  ;;  %v1604_v47 = vmul.f32 %v8972_v18, %v8956_v61  ;;  %v9005_v19 = vmul.f32 %v8995_v9, %v8956_v61 }
 0x260   : > { %v1177_v3 = vpop.permute.xlu0 %1176  ;;  %v1187_v36 = vpop.permute.xlu1 %1186 }
 0x261   : > { %v1281_v38 = vsel %vm1275_vm5, %v8876_v55, %v1177_v3  ;;  %v8975_v55 = vrot.slane %v8507_v43, %v1502_v15 }
 0x262   : > { %v1282_v23 = vsel %vm1277_vm6, %v1281_v38, %v1187_v36  ;;  %v1465_v36 = vcombine.low %v1457_v39, %v1457_v39  ;;  %v1456_v38 = vld [vmem:[%s8939_s26 + $0x10] sm:$0xff]  ;;  %s7668_s26 = sshll.u32 %s338_s25, 6 }
 0x263   : > { %v1603_v51 = vmul.f32 %v8975_v55, %v8947_v29  ;;  %s340_s17 = scalar_lea.vmem [#allocation2], %s7668_s26 }
 0x264   : > { %v1159_v31 = vpop.permute.xlu0 %1158  ;;  %v1197_v30 = vpop.permute.xlu1 %1196 }
 0x265   : > { %v1280_v33 = vsel %vm1279_vm7, %v1278_v34, %v1159_v31  ;;  %v1283_v6 = vsel %vm1279_vm7, %v1282_v23, %v1197_v30  ;;  %v1464_v31 = vcombine.low %v1456_v38, %v1456_v38  ;;  %v1518_v34 = vsub.s32 7, %v8495_v40 }
 0x266   : > { %v8978_v50 = vsel %vm1470_vm8, %v1280_v33, %v1462_v60  ;;  %v8981_v48 = vsel %vm1470_vm8, %v1283_v6, %v1454_v2 }
 0x267   : > { %1624 = vrot.lane.b32.xlu0 %v8978_v50, %s8284_s16  ;;  %1626 = vrot.lane.b32.xlu1 %v8981_v48, %s8284_s16  ;;  %v1602_v12 = vmul.f32 %v9019_v32, %v8981_v48  ;;  %v1601_v59 = vmul.f32 %v9023_v21, %v8978_v50  ;;  %v9042_v26 = vmul.f32 %v9033_v63, %v8978_v50 }
 0x268   : > { %v1393_v58 = vpop.permute.xlu0 %1392  ;;  %v1420_v57 = vpop.permute.xlu1 %1419  ;;  %v9046_v37 = vmul.f32 %v9036_v56, %v8981_v48 }
 0x269   : > { %v1451_v2 = vsel %vm1275_vm5, %v8884_v17, %v1420_v57 }
 0x26b   : > { %1961 = vrot.lane.b32.xlu0 %v1604_v47, %s8286_s28  ;;  %1959 = vrot.lane.b32.xlu1 %v1603_v51, %s8286_s28 }
 0x26c   : > { %v1384_v13 = vpop.permute.xlu0 %1383  ;;  %v1430_v24 = vpop.permute.xlu1 %1429 }
 0x26d   : > { %v1448_v22 = vsel %vm1275_vm5, %v8895_v10, %v1384_v13  ;;  %v1452_v3 = vsel %vm1277_vm6, %v1451_v2, %v1430_v24 }
 0x26e   : > { %v1449_v54 = vsel %vm1277_vm6, %v1448_v22, %v1393_v58  ;;  %v9093_v58 = vrot.slane %v8507_v43, %v1518_v34 }
 0x26f   : > { %2292 = vrot.lane.b32.xlu0 %v9001_v5, %s8285_s27  ;;  %2294 = vrot.lane.b32.xlu1 %v9005_v19, %s8285_s27 }
 0x270   : > { %v1317_v0 = vpop.permute.xlu0 %1316  ;;  %v1440_v25 = vpop.permute.xlu1 %1439 }
 0x271   : > { %v1453_v4 = vsel %vm1279_vm7, %v1452_v3, %v1440_v25 }
 0x272   : > { %v9076_v30 = vsel %vm1470_vm8, %v1453_v4, %v1457_v39 }
 0x273   : > { %2626 = vrot.lane.b32.xlu0 %v1604_v47, %s8288_s14  ;;  %2624 = vrot.lane.b32.xlu1 %v1603_v51, %s8288_s14 }
 0x274   : > { %v1402_v35 = vpop.permute.xlu0 %1401  ;;  %v1344_v53 = vpop.permute.xlu1 %1343 }
 0x275   : > { %v1450_v15 = vsel %vm1279_vm7, %v1449_v54, %v1402_v35  ;;  %v1445_v23 = vsel %vm1275_vm5, %v8912_v16, %v1344_v53  ;;  %v1514_v53 = vsub.s32 6, %v8495_v40 }
 0x276   : > { %v9079_v33 = vsel %vm1470_vm8, %v1450_v15, %v1465_v36 }
 0x277   : > { %3254 = vrot.lane.b32.xlu0 %v9005_v19, %s8287_s29  ;;  %3252 = vrot.lane.b32.xlu1 %v9001_v5, %s8287_s29  ;;  %v1607_v24 = vmul.f32 %v9093_v58, %v9079_v33  ;;  %v9155_v39 = vrot.slane %v8502_v42, %v1514_v53 }
 0x278   : > { %v1308_v8 = vpop.permute.xlu0 %1307  ;;  %v1354_v14 = vpop.permute.xlu1 %1353 }
 0x279   : > { %v1442_v10 = vsel %vm1275_vm5, %v8916_v7, %v1308_v8  ;;  %v1446_v7 = vsel %vm1277_vm6, %v1445_v23, %v1354_v14  ;;  %v9147_v14 = vrot.slane %v8507_v43, %v1514_v53 }
 0x27a   : > { %v1443_v6 = vsel %vm1277_vm6, %v1442_v10, %v1317_v0  ;;  %v9117_v0 = vrot.slane %v8502_v42, %v1518_v34  ;;  %v4574_v34 = vld [vmem:[%s10009_s6] sm:$0xff] }
 0x27b   : > { %3585 = vrot.lane.b32.xlu0 %v1603_v51, %s8291_s23  ;;  %3587 = vrot.lane.b32.xlu1 %v1604_v47, %s8291_s23  ;;  %v7723_v47 = vld [vmem:[%s10005_s2 + $0x11] ss:$2 sm:$0x3] }
 0x27c   : > { %v1326_v60 = vpop.permute.xlu0 %1325  ;;  %v1364_v17 = vpop.permute.xlu1 %1363  ;;  %v9096_v57 = vrot.slane %v7723_v47, %v8511_v44  ;;  %v9127_v35 = vmul.f32 %v9117_v0, %v9079_v33  ;;  %v1589_v22 = vrot.slane %v7723_v47, %v8519_v46 }
 0x27d   : > { %v1444_v51 = vsel %vm1279_vm7, %v1443_v6, %v1326_v60  ;;  %v1447_v16 = vsel %vm1279_vm7, %v1446_v7, %v1364_v17  ;;  %v9206_v60 = vld [vmem:[%s10008_s5 + $0x8] sm:$0xff] }
 0x27e   : > { %v9099_v62 = vsel %vm1470_vm8, %v1444_v51, %v1464_v31  ;;  %v9102_v13 = vsel %vm1470_vm8, %v1447_v16, %v1456_v38  ;;  %v1609_v2 = vmul.f32 0.0, %v1589_v22 }
 0x27f   : > { %1957 = vrot.lane.b32.xlu0 %v1602_v12, %s8286_s28  ;;  %1955 = vrot.lane.b32.xlu1 %v1601_v59, %s8286_s28 }
 0x283   : > { %2288 = vrot.lane.b32.xlu0 %v9042_v26, %s8285_s27  ;;  %2290 = vrot.lane.b32.xlu1 %v9046_v37, %s8285_s27 }
 0x287   : > { %2622 = vrot.lane.b32.xlu0 %v1602_v12, %s8288_s14  ;;  %2620 = vrot.lane.b32.xlu1 %v1601_v59, %s8288_s14 }
 0x28b   : > { %3250 = vrot.lane.b32.xlu0 %v9046_v37, %s8287_s29  ;;  %3583 = vrot.lane.b32.xlu1 %v1602_v12, %s8291_s23  ;;  %v1608_v12 = vmul.f32 %v9096_v57, %v9076_v30 }
 0x28f   : > { %3248 = vrot.lane.b32.xlu0 %v9042_v26, %s8287_s29  ;;  %3581 = vrot.lane.b32.xlu1 %v1601_v59, %s8291_s23  ;;  %v9114_v59 = vrot.slane %v8516_v45, %v8511_v44  ;;  %v1510_v44 = vsub.s32 5, %v8495_v40  ;;  %v1606_v40 = vmul.f32 %v9147_v14, %v9102_v13 }
 0x291   : > { %v9123_v25 = vmul.f32 %v9114_v59, %v9076_v30  ;;  %v9137_v45 = vrot.slane %v8507_v43, %v1510_v44  ;;  %v1544_v43 = vmul.f32 %v9155_v39, %v9102_v13  ;;  %v9162_v3 = vrot.slane %v8502_v42, %v1510_v44 }
 0x293   : > { %1638 = vrot.lane.b32.xlu0 %v9076_v30, %s8284_s16  ;;  %1636 = vrot.lane.b32.xlu1 %v9079_v33, %s8284_s16  ;;  %v1605_v8 = vmul.f32 %v9137_v45, %v9099_v62  ;;  %v1543_v46 = vmul.f32 %v9162_v3, %v9099_v62 }
 0x297   : > { %1634 = vrot.lane.b32.xlu0 %v9102_v13, %s8284_s16  ;;  %1632 = vrot.lane.b32.xlu1 %v9099_v62, %s8284_s16 }
 0x29b   : > { %1967 = vrot.lane.b32.xlu0 %v1607_v24, %s8286_s28  ;;  %1969 = vrot.lane.b32.xlu1 %v1608_v12, %s8286_s28 }
 0x29f   : > { %2302 = vrot.lane.b32.xlu0 %v9123_v25, %s8285_s27  ;;  %2300 = vrot.lane.b32.xlu1 %v9127_v35, %s8285_s27 }
 0x2a3   : > { %2632 = vrot.lane.b32.xlu0 %v1607_v24, %s8288_s14  ;;  %2634 = vrot.lane.b32.xlu1 %v1608_v12, %s8288_s14 }
 0x2a7   : > { %3260 = vrot.lane.b32.xlu0 %v9127_v35, %s8287_s29  ;;  %3262 = vrot.lane.b32.xlu1 %v9123_v25, %s8287_s29 }
 0x2ab   : > { %1963 = vrot.lane.b32.xlu0 %v1605_v8, %s8286_s28  ;;  %3593 = vrot.lane.b32.xlu1 %v1607_v24, %s8291_s23 }
 0x2af   : > { %3595 = vrot.lane.b32.xlu0 %v1608_v12, %s8291_s23  ;;  %1965 = vrot.lane.b32.xlu1 %v1606_v40, %s8286_s28 }
 0x2b3   : > { %2298 = vrot.lane.b32.xlu0 %v1544_v43, %s8285_s27  ;;  %3597 = vrot.lane.b32.xlu1 %v1609_v2, %s8291_s23 }
 0x2b7   : > { %3915 = vrot.lane.b32.xlu0 %v8981_v48, %s8290_s21  ;;  %2296 = vrot.lane.b32.xlu1 %v1543_v46, %s8285_s27 }
 0x2bb   : > { %2628 = vrot.lane.b32.xlu0 %v1605_v8, %s8288_s14  ;;  %3917 = vrot.lane.b32.xlu1 %v8947_v29, %s8290_s21 }
 0x2bf   : > { %3919 = vrot.lane.b32.xlu0 %v8956_v61, %s8290_s21  ;;  %2630 = vrot.lane.b32.xlu1 %v1606_v40, %s8288_s14 }
 0x2c3   : > { %3913 = vrot.lane.b32.xlu0 %v8978_v50, %s8290_s21  ;;  %3921 = vrot.lane.b32.xlu1 %v9099_v62, %s8290_s21 }
 0x2c7   : > { %3925 = vrot.lane.b32.xlu0 %v9079_v33, %s8290_s21  ;;  %3923 = vrot.lane.b32.xlu1 %v9102_v13, %s8290_s21 }
 0x2cb   : > { %3929 = vrot.lane.b32.xlu0 %v10013_v41, %s8290_s21  ;;  %3256 = vrot.lane.b32.xlu1 %v1543_v46, %s8287_s29 }
 0x2cd   : > { %v1629_v42 = vpop.permute.xlu0 %1628 }
 0x2cf   : > { %3589 = vrot.lane.b32.xlu0 %v1605_v8, %s8291_s23  ;;  %3258 = vrot.lane.b32.xlu1 %v1544_v43, %s8287_s29 }
 0x2d1   : > { %v9190_v36 = vpop.permute.xlu1 %1630 }
 0x2d2   : > { %v1643_v54 = vsel %vm1275_vm5, %v1629_v42, %v9190_v36 }
 0x2d3   : > { %3591 = vrot.lane.b32.xlu0 %v1606_v40, %s8291_s23  ;;  %1731 = vmatprep.subr.mxu1 %v1643_v54 }
 0x2d4   : > { %3927 = vrot.lane.b32.xlu1 %v9076_v30, %s8290_s21 }
 0x2d7   : > { %4248 = vrot.lane.b32.xlu0 %v9001_v5, %s8292_s24 }
 0x2d8   : > { %4246 = vrot.lane.b32.xlu1 %v9046_v37, %s8292_s24 }
 0x2d9   : > { %v1625_v38 = vpop.permute.xlu0 %1624  ;;  %v1627_v4 = vpop.permute.xlu1 %1626 }
 0x2da   : > { %v1641_v15 = vsel %vm1275_vm5, %v1625_v38, %v1627_v4  ;;  %v1642_v10 = vsel %vm1275_vm5, %v1627_v4, %v1629_v42  ;;  %v1640_v5 = vsel %vm1275_vm5, %v8925_v11, %v1625_v38 }
 0x2db   : > { %4252 = vrot.lane.b32.xlu0 %v1543_v46, %s8292_s24  ;;  %1660 = vmatprep.subr.mxu0 %v1641_v15 }
 0x2dc   : > { %1732 = vmatpush1.msra.mxu1 %v1642_v10  ;;  %4250 = vrot.lane.b32.xlu1 %v9005_v19, %s8292_s24  ;;  %v8293_v19 = vmov 0  }
 0x2dd   : > { %1661 = vmatpush1.msra.mxu0 %v1640_v5  ;;  %v9213_v37 = vpop.permute.xlu0 %1961  ;;  %v1960_v17 = vpop.permute.xlu1 %1959  ;;  %7726 = vmatmul.mubr.msk.f32.vlgmr.msra.gmra.mrb[16].mxu1 %vm1656_vm9, %v9206_v60 }
 0x2de   : > { %7725 = vmatmul.mubr.msk.f32.vlgmr.msra.gmra.mrb[16].mxu0 %vm1656_vm9, %v9206_v60  ;;  %1937 = vmatprep.mubr.f32.mxu1 %v10013_v41  ;;  %v1975_v10 = vsel %vm1971_vm10, %v1960_v17, %v9213_v37 }
 0x2df   : > { %4254 = vrot.lane.b32.xlu0 %v1544_v43, %s8292_s24  ;;  %1866 = vmatprep.mubr.f32.mxu0 %v10013_v41 }
 0x2e0   : > { %4244 = vrot.lane.b32.xlu1 %v9042_v26, %s8292_s24  ;;  %8214 = vset.pattern.permute.xlu0 %v8293_v19 }
 0x2e1   : > { %v9224_v23 = vpop.permute.xlu0 %2292  ;;  %v9226_v31 = vpop.permute.xlu1 %2294 }
 0x2e3   : > { %4258 = vrot.lane.b32.xlu0 %v9123_v25, %s8292_s24 }
 0x2e4   : > { %4256 = vrot.lane.b32.xlu1 %v9127_v35, %s8292_s24 }
 0x2e5   : > { %v9235_v7 = vpop.permute.xlu0 %2626  ;;  %v9237_v6 = vpop.permute.xlu1 %2624 }
 0x2e7   : > { %4577 = vperm.xlu0 %8214, %v4574_v34  }
 0x2e8   : > { %4260 = vrot.lane.b32.xlu1 %v8530_v52, %s8292_s24 }
 0x2e9   : > { %v9241_v26 = vpop.permute.xlu0 %3254  ;;  %v9243_v47 = vpop.permute.xlu1 %3252 }
 0x2ed   : > { %v9245_v51 = vpop.permute.xlu0 %3585  ;;  %v9247_v16 = vpop.permute.xlu1 %3587 }
 0x2f1   : > { %v1958_v24 = vpop.permute.xlu0 %1957  ;;  %v1956_v12 = vpop.permute.xlu1 %1955 }
 0x2f2   : > { %v1974_v5 = vsel %vm1971_vm10, %v1958_v24, %v1960_v17  ;;  %v1973_v34 = vsel %vm1971_vm10, %v1956_v12, %v1958_v24 }
 0x2f5   : > { %v9249_v25 = vpop.permute.xlu0 %2288  ;;  %v9251_v35 = vpop.permute.xlu1 %2290 }
 0x2f9   : > { %v9253_v44 = vpop.permute.xlu0 %2622  ;;  %v9255_v53 = vpop.permute.xlu1 %2620 }
 0x2fd   : > { %v9257_v8 = vpop.permute.xlu0 %3250  ;;  %v9259_v52 = vpop.permute.xlu1 %3583 }
 0x301   : > { %v9261_v22 = vpop.permute.xlu0 %3248  ;;  %v9263_v40 = vpop.permute.xlu1 %3581 }
 0x305   : > { %v1639_v2 = vpop.permute.xlu0 %1638  ;;  %v1637_v43 = vpop.permute.xlu1 %1636 }
 0x306   : > { %v1647_v46 = vsel %vm1275_vm5, %v1637_v43, %v1639_v2 }
 0x307   : > { %1873 = vmatprep.subr.mxu1 %v1647_v46  ;;  %v1610_v46 = vld [vmem:[%s10008_s5] sm:$0xff] }
 0x309   : > { %v1635_v42 = vpop.permute.xlu0 %1634  ;;  %v1633_v54 = vpop.permute.xlu1 %1632 }
 0x30a   : > { %v1646_v38 = vsel %vm1275_vm5, %v1635_v42, %v1637_v43  ;;  %v1645_v4 = vsel %vm1275_vm5, %v1633_v54, %v1635_v42  ;;  %v1644_v15 = vsel %vm1275_vm5, %v9190_v36, %v1633_v54  ;;  %v1972_v36 = vsel %vm1971_vm10, %v8929_v28, %v1956_v12 }
 0x30b   : > { %1874 = vmatpush1.msra.mxu1 %v1646_v38  ;;  %1802 = vmatprep.subr.mxu0 %v1645_v4 }
 0x30c   : > { %2062 = vmatprep.subr.mxu1 %v1975_v10  ;;  %7728 = vmatmul.mubr.msk.f32.vlgmr.msra.gmra.mrb[18].mxu1 %vm1656_vm9, %v9206_v60 }
 0x30d   : > { %2063 = vmatpush1.msra.mxu1 %v1974_v5  ;;  %v1968_v19 = vpop.permute.xlu0 %1967  ;;  %1803 = vmatpush1.msra.mxu0 %v1644_v15  ;;  %v1970_v2 = vpop.permute.xlu1 %1969 }
 0x30e   : > { %1991 = vmatprep.subr.mxu0 %v1973_v34  ;;  %7727 = vmatmul.mubr.msk.f32.vlgmr.msra.gmra.mrb[18].mxu0 %vm1656_vm9, %v9206_v60  ;;  %v1979_v43 = vsel %vm1971_vm10, %v1968_v19, %v1970_v2 }
 0x30f   : > { %1992 = vmatpush1.msra.mxu0 %v1972_v36  ;;  %2204 = vmatprep.subr.mxu1 %v1979_v43  ;;  %v2308_v36 = vsel %vm2304_vm11, %v9224_v23, %v9226_v31 }
 0x310   : > { %2126 = vmatprep.mubr.f32.mxu1 %v10013_v41  ;;  %2055 = vmatprep.mubr.f32.mxu0 %v10013_v41 }
 0x311   : > { %v2303_v17 = vpop.permute.xlu0 %2302  ;;  %v2301_v24 = vpop.permute.xlu1 %2300  ;;  %7730 = vmatmul.mubr.msk.f32.vlgmr.msra.gmra.mrb[16].mxu1 %vm1656_vm9, %v1610_v46 }
 0x312   : > { %7729 = vmatmul.mubr.msk.f32.vlgmr.msra.gmra.mrb[16].mxu0 %vm1656_vm9, %v1610_v46  ;;  %2268 = vmatprep.mubr.f32.mxu1 %v10013_v41 }
 0x313   : > { %2197 = vmatprep.mubr.f32.mxu0 %v10013_v41 }
 0x315   : > { %v9290_v60 = vpop.permute.xlu0 %2632  ;;  %v2635_v12 = vpop.permute.xlu1 %2634 }
 0x319   : > { %v9292_v42 = vpop.permute.xlu0 %3260  ;;  %v9294_v54 = vpop.permute.xlu1 %3262 }
 0x31d   : > { %v1964_v38 = vpop.permute.xlu0 %1963  ;;  %v9296_v4 = vpop.permute.xlu1 %3593 }
 0x31e   : > { %v1976_v2 = vsel %vm1971_vm10, %v9213_v37, %v1964_v38  ;;  %v2306_v37 = vsel %vm2304_vm11, %v9249_v25, %v9251_v35 }
 0x321   : > { %v9298_v15 = vpop.permute.xlu0 %3595  ;;  %v1966_v10 = vpop.permute.xlu1 %1965 }
 0x322   : > { %v1978_v5 = vsel %vm1971_vm10, %v1966_v10, %v1968_v19  ;;  %v1977_v34 = vsel %vm1971_vm10, %v1964_v38, %v1966_v10  ;;  %v2307_v19 = vsel %vm2304_vm11, %v9251_v35, %v9224_v23  ;;  %v2305_v38 = vsel %vm2304_vm11, %v8927_v27, %v9249_v25  ;;  %v7733_v23 = vld [vmem:[%s10008_s5 + $0x10] sm:$0xff] }
 0x323   : > { %2133 = vmatprep.subr.mxu0 %v1977_v34  ;;  %2205 = vmatpush1.msra.mxu1 %v1978_v5  ;;  %v2312_v10 = vsel %vm2304_vm11, %v2301_v24, %v2303_v17  ;;  %v2640_v17 = vsel %vm2636_vm12, %v9237_v6, %v9235_v7 }
 0x324   : > { %2134 = vmatpush1.msra.mxu0 %v1976_v2  ;;  %7732 = vmatmul.mubr.msk.f32.vlgmr.msra.gmra.mrb[18].mxu1 %vm1656_vm9, %v1610_v46 }
 0x325   : > { %2395 = vmatprep.subr.mxu1 %v2308_v36  ;;  %v2299_v43 = vpop.permute.xlu0 %2298  ;;  %v9311_v41 = vpop.permute.xlu1 %3597  ;;  %7731 = vmatmul.mubr.msk.f32.vlgmr.msra.gmra.mrb[18].mxu0 %vm1656_vm9, %v1610_v46  ;;  %v10019_v46 = vmov 0.0  }
 0x326   : > { %2396 = vmatpush1.msra.mxu1 %v2307_v19  ;;  %2324 = vmatprep.subr.mxu0 %v2306_v37  ;;  %v2311_v35 = vsel %vm2304_vm11, %v2299_v43, %v2301_v24  ;;  %v2639_v24 = vsel %vm2636_vm12, %v9253_v44, %v9237_v6  ;;  %v2644_v19 = vsel %vm2636_vm12, %v9290_v60, %v2635_v12  ;;  %v7738_v6 = vld [vmem:[%s10008_s5 + $0x18] sm:$0xff] }
 0x327   : > { %2325 = vmatpush1.msra.mxu0 %v2305_v38  ;;  %2537 = vmatprep.subr.mxu1 %v2312_v10  ;;  %v2637_v37 = vsel %vm2636_vm12, %v8933_v20, %v9255_v53 }
 0x328   : > { %2459 = vmatprep.mubr.f32.mxu1 %v10019_v46  ;;  %2388 = vmatprep.mubr.f32.mxu0 %v10019_v46 }
 0x329   : > { %7735 = vmatmul.mubr.msk.f32.vlgmr.msra.gmra.mrb[16].mxu1 %vm1656_vm9, %v7733_v23  ;;  %v9328_v5 = vpop.permute.xlu0 %3915  ;;  %7734 = vmatmul.mubr.msk.f32.vlgmr.msra.gmra.mrb[16].mxu0 %vm1656_vm9, %v7733_v23  ;;  %v2297_v25 = vpop.permute.xlu1 %2296 }
 0x32a   : > { %2538 = vmatpush1.msra.mxu1 %v2311_v35  ;;  %v2309_v34 = vsel %vm2304_vm11, %v9226_v31, %v2297_v25  ;;  %v2310_v2 = vsel %vm2304_vm11, %v2297_v25, %v2299_v43  ;;  %2601 = vmatprep.mubr.f32.mxu1 %v10019_v46  ;;  %v2638_v31 = vsel %vm2636_vm12, %v9255_v53, %v9253_v44 }
 0x32b   : > { %2727 = vmatprep.subr.mxu1 %v2640_v17  ;;  %2466 = vmatprep.subr.mxu0 %v2310_v2  ;;  %v3269_v35 = vsel %vm3266_vm13, %v9243_v47, %v9241_v26  ;;  %v3273_v17 = vsel %vm3266_vm13, %v9292_v42, %v9294_v54 }
 0x32c   : > { %2530 = vmatprep.mubr.f32.mxu0 %v10019_v46  ;;  %2467 = vmatpush1.msra.mxu0 %v2309_v34 }
 0x32d   : > { %7737 = vmatmul.mubr.msk.f32.vlgmr.msra.gmra.mrb[18].mxu1 %vm1656_vm9, %v7733_v23  ;;  %v2629_v36 = vpop.permute.xlu0 %2628  ;;  %7736 = vmatmul.mubr.msk.f32.vlgmr.msra.gmra.mrb[18].mxu0 %vm1656_vm9, %v7733_v23  ;;  %v9347_v43 = vpop.permute.xlu1 %3917 }
 0x32e   : > { %2728 = vmatpush1.msra.mxu1 %v2639_v24  ;;  %2656 = vmatprep.subr.mxu0 %v2638_v31  ;;  %v2641_v10 = vsel %vm2636_vm12, %v9235_v7, %v2629_v36  ;;  %v7743_v7 = vld [vmem:[%s10008_s5 + $0x20] sm:$0xff]  ;;  %v3602_v24 = vsel %vm3599_vm14, %v9245_v51, %v9247_v16 }
 0x32f   : > { %2869 = vmatprep.subr.mxu1 %v2644_v19  ;;  %2657 = vmatpush1.msra.mxu0 %v2637_v37  ;;  %v3607_v19 = vsel %vm3599_vm14, %v9298_v15, %v9311_v41 }
 0x330   : > { %2791 = vmatprep.mubr.f32.mxu1 %v10019_v46  ;;  %2720 = vmatprep.mubr.f32.mxu0 %v10019_v46 }
 0x331   : > { %7740 = vmatmul.mubr.msk.f32.vlgmr.msra.gmra.mrb[16].mxu1 %vm1656_vm9, %v7738_v6  ;;  %v9360_v44 = vpop.permute.xlu0 %3919  ;;  %7739 = vmatmul.mubr.msk.f32.vlgmr.msra.gmra.mrb[16].mxu0 %vm1656_vm9, %v7738_v6  ;;  %v2631_v12 = vpop.permute.xlu1 %2630 }
 0x332   : > { %v2643_v53 = vsel %vm2636_vm12, %v2631_v12, %v9290_v60  ;;  %v2642_v38 = vsel %vm2636_vm12, %v2629_v36, %v2631_v12  ;;  %2933 = vmatprep.mubr.f32.mxu1 %v10019_v46  ;;  %2862 = vmatprep.mubr.f32.mxu0 %v10019_v46 }
 0x333   : > { %2798 = vmatprep.subr.mxu0 %v2642_v38  ;;  %2870 = vmatpush1.msra.mxu1 %v2643_v53 }
 0x334   : > { %2799 = vmatpush1.msra.mxu0 %v2641_v10  ;;  %3024 = vmatprep.subr.mxu1 %v8956_v61 }
 0x335   : > { %v9371_v23 = vpop.permute.xlu0 %3913  ;;  %7742 = vmatmul.mubr.msk.f32.vlgmr.msra.gmra.mrb[18].mxu1 %vm1656_vm9, %v7738_v6  ;;  %7741 = vmatmul.mubr.msk.f32.vlgmr.msra.gmra.mrb[18].mxu0 %vm1656_vm9, %v7738_v6  ;;  %v9375_v60 = vpop.permute.xlu1 %3921  ;;  %v3932_v6 = vsel %vm1279_vm7, %v9328_v5, %v9347_v43 }
 0x336   : > { %2953 = vmatprep.subr.mxu0 %v8981_v48  ;;  %3025 = vmatpush1.msra.mxu1 %v8947_v29  ;;  %v3268_v29 = vsel %vm3266_vm13, %v9257_v8, %v9243_v47  ;;  %v3934_v12 = vsel %vm1279_vm7, %v9360_v44, %v9375_v60  ;;  %v3931_v53 = vsel %vm1279_vm7, %v9371_v23, %v9328_v5 }
 0x337   : > { %2954 = vmatpush1.msra.mxu0 %v8978_v50  ;;  %3166 = vmatprep.subr.mxu1 %v9076_v30 }
 0x338   : > { %3088 = vmatprep.mubr.f32.mxu1 %v10019_v46  ;;  %3095 = vmatprep.subr.mxu0 %v9102_v13  ;;  %v7748_v13 = vld [vmem:[%s10008_s5 + $0x28] sm:$0xff] }
 0x339   : > { %v9386_v61 = vpop.permute.xlu0 %3925  ;;  %3017 = vmatprep.mubr.f32.mxu0 %v10019_v46  ;;  %7745 = vmatmul.mubr.msk.f32.vlgmr.msra.gmra.mrb[16].mxu1 %vm1656_vm9, %v7743_v7  ;;  %v9390_v48 = vpop.permute.xlu1 %3923 }
 0x33a   : > { %3167 = vmatpush1.msra.mxu1 %v9079_v33  ;;  %7744 = vmatmul.mubr.msk.f32.vlgmr.msra.gmra.mrb[16].mxu0 %vm1656_vm9, %v7743_v7  ;;  %v3267_v33 = vsel %vm3266_vm13, %v9261_v22, %v9257_v8  ;;  %v3274_v8 = vsel %vm3266_vm13, %v9294_v54, %v8931_v49  ;;  %v3601_v54 = vsel %vm3599_vm14, %v9259_v52, %v9245_v51 }
 0x33b   : > { %3096 = vmatpush1.msra.mxu0 %v9099_v62  ;;  %3159 = vmatprep.mubr.f32.mxu0 %v10019_v46  ;;  %v3606_v51 = vsel %vm3599_vm14, %v9296_v4, %v9298_v15  ;;  %v3933_v15 = vsel %vm1279_vm7, %v9347_v43, %v9360_v44  ;;  %v3936_v10 = vsel %vm1279_vm7, %v9390_v48, %v9386_v61  ;;  %v7758_v43 = vld [vmem:[%s10008_s5 + $0x38] sm:$0xff] }
 0x33c   : > { %3286 = vmatprep.subr.mxu0 %v3268_v29  ;;  %3230 = vmatprep.mubr.f32.mxu1 %v10019_v46  ;;  %v3935_v5 = vsel %vm1279_vm7, %v9375_v60, %v9390_v48 }
 0x33d   : > { %v9400_v50 = vpop.permute.xlu0 %3929  ;;  %7747 = vmatmul.mubr.msk.f32.vlgmr.msra.gmra.mrb[18].mxu1 %vm1656_vm9, %v7743_v7  ;;  %v3257_v30 = vpop.permute.xlu1 %3256 }
 0x33e   : > { %7746 = vmatmul.mubr.msk.f32.vlgmr.msra.gmra.mrb[18].mxu0 %vm1656_vm9, %v7743_v7  ;;  %v3270_v62 = vsel %vm3266_vm13, %v9241_v26, %v3257_v30  ;;  %3421 = vmatprep.mubr.f32.mxu1 %v10019_v46 }
 0x33f   : > { %3287 = vmatpush1.msra.mxu0 %v3267_v33  ;;  %3357 = vmatprep.subr.mxu1 %v3270_v62 }
 0x340   : > { %3350 = vmatprep.mubr.f32.mxu0 %v10019_v46  ;;  %3358 = vmatpush1.msra.mxu1 %v3269_v35 }
 0x341   : > { %v3590_v22 = vpop.permute.xlu0 %3589  ;;  %7750 = vmatmul.mubr.msk.f32.vlgmr.msra.gmra.mrb[16].mxu1 %vm1656_vm9, %v7748_v13  ;;  %3499 = vmatprep.subr.mxu1 %v3274_v8  ;;  %v3259_v25 = vpop.permute.xlu1 %3258 }
 0x342   : > { %7749 = vmatmul.mubr.msk.f32.vlgmr.msra.gmra.mrb[16].mxu0 %vm1656_vm9, %v7748_v13  ;;  %v3271_v26 = vsel %vm3266_vm13, %v3257_v30, %v3259_v25  ;;  %3500 = vmatpush1.msra.mxu1 %v3273_v17  ;;  %v3272_v47 = vsel %vm3266_vm13, %v3259_v25, %v9292_v42  ;;  %v3603_v34 = vsel %vm3599_vm14, %v9247_v16, %v3590_v22 }
 0x343   : > { %3428 = vmatprep.subr.mxu0 %v3272_v47  ;;  %3690 = vmatprep.subr.mxu1 %v3603_v34  ;;  %v3600_v42 = vsel %vm3599_vm14, %v9263_v40, %v9259_v52  ;;  %v7753_v52 = vld [vmem:[%s10008_s5 + $0x30] sm:$0xff] }
 0x344   : > { %3429 = vmatpush1.msra.mxu0 %v3271_v26  ;;  %3492 = vmatprep.mubr.f32.mxu0 %v10019_v46 }
 0x345   : > { %v3592_v2 = vpop.permute.xlu0 %3591  ;;  %3563 = vmatprep.mubr.f32.mxu1 %v10019_v46  ;;  %3619 = vmatprep.subr.mxu0 %v3601_v54 }
 0x346   : > { %7751 = vmatmul.mubr.msk.f32.vlgmr.msra.gmra.mrb[18].mxu0 %vm1656_vm9, %v7748_v13  ;;  %7752 = vmatmul.mubr.msk.f32.vlgmr.msra.gmra.mrb[18].mxu1 %vm1656_vm9, %v7748_v13  ;;  %v3928_v36 = vpop.permute.xlu1 %3927  ;;  %v3605_v31 = vsel %vm3599_vm14, %v3592_v2, %v9296_v4  ;;  %v3604_v16 = vsel %vm3599_vm14, %v3590_v22, %v3592_v2  ;;  %v7763_v13 = vld [vmem:[%s10008_s5 + $0x40] sm:$0xff] }
 0x347   : > { %3691 = vmatpush1.msra.mxu1 %v3602_v24  ;;  %3620 = vmatpush1.msra.mxu0 %v3600_v42  ;;  %v3938_v7 = vsel %vm1279_vm7, %v3928_v36, %v9400_v50  ;;  %v3937_v44 = vsel %vm1279_vm7, %v9386_v61, %v3928_v36 }
 0x348   : > { %3832 = vmatprep.subr.mxu1 %v3607_v19  ;;  %3761 = vmatprep.subr.mxu0 %v3605_v31 }
 0x349   : > { %v4249_v40 = vpop.permute.xlu0 %4248  ;;  %3683 = vmatprep.mubr.f32.mxu0 %v10019_v46  ;;  %3754 = vmatprep.mubr.f32.mxu1 %v10019_v46 }
 0x34a   : > { %7754 = vmatmul.mubr.msk.f32.vlgmr.msra.gmra.mrb[16].mxu0 %vm1656_vm9, %v7753_v52  ;;  %7755 = vmatmul.mubr.msk.f32.vlgmr.msra.gmra.mrb[16].mxu1 %vm1656_vm9, %v7753_v52  ;;  %v4247_v37 = vpop.permute.xlu1 %4246 }
 0x34b   : > { %3762 = vmatpush1.msra.mxu0 %v3604_v16  ;;  %3833 = vmatpush1.msra.mxu1 %v3606_v51  ;;  %v4264_v30 = vsel %vm4262_vm15, %v4247_v37, %v4249_v40 }
 0x34c   : > { %3950 = vmatprep.subr.mxu0 %v3932_v6  ;;  %4021 = vmatprep.subr.mxu1 %v3934_v12 }
 0x34d   : > { %v4253_v4 = vpop.permute.xlu0 %4252  ;;  %3825 = vmatprep.mubr.f32.mxu0 %v10019_v46  ;;  %3896 = vmatprep.mubr.f32.mxu1 %v10019_v46 }
 0x34e   : > { %7756 = vmatmul.mubr.msk.f32.vlgmr.msra.gmra.mrb[18].mxu0 %vm1656_vm9, %v7753_v52  ;;  %7757 = vmatmul.mubr.msk.f32.vlgmr.msra.gmra.mrb[18].mxu1 %vm1656_vm9, %v7753_v52  ;;  %v4251_v38 = vpop.permute.xlu1 %4250 }
 0x34f   : > { %3951 = vmatpush1.msra.mxu0 %v3931_v53  ;;  %4022 = vmatpush1.msra.mxu1 %v3933_v15  ;;  %v4266_v33 = vsel %vm4262_vm15, %v4251_v38, %v4253_v4  ;;  %v4265_v60 = vsel %vm4262_vm15, %v4249_v40, %v4251_v38 }
 0x350   : > { %4092 = vmatprep.subr.mxu0 %v3936_v10  ;;  %4163 = vmatprep.subr.mxu1 %v3938_v7 }
 0x351   : > { %4014 = vmatprep.mubr.f32.mxu0 %v10019_v46  ;;  %4085 = vmatprep.mubr.f32.mxu1 %v10019_v46  ;;  %v4255_v29 = vpop.permute.xlu0 %4254 }
 0x352   : > { %7759 = vmatmul.mubr.msk.f32.vlgmr.msra.gmra.mrb[16].mxu0 %vm1656_vm9, %v7758_v43  ;;  %7760 = vmatmul.mubr.msk.f32.vlgmr.msra.gmra.mrb[16].mxu1 %vm1656_vm9, %v7758_v43  ;;  %v4245_v23 = vpop.permute.xlu1 %4244  ;;  %v4267_v8 = vsel %vm4262_vm15, %v4253_v4, %v4255_v29 }
 0x353   : > { %4093 = vmatpush1.msra.mxu0 %v3935_v5  ;;  %4164 = vmatpush1.msra.mxu1 %v3937_v44  ;;  %v4263_v61 = vsel %vm4262_vm15, %v4245_v23, %v4247_v37 }
 0x354   : > { %4282 = vmatprep.subr.mxu0 %v4264_v30  ;;  %4353 = vmatprep.subr.mxu1 %v4266_v33 }
 0x355   : > { %4156 = vmatprep.mubr.f32.mxu0 %v10019_v46  ;;  %4227 = vmatprep.mubr.f32.mxu1 %v10019_v46  ;;  %v4259_v35 = vpop.permute.xlu0 %4258 }
 0x356   : > { %7761 = vmatmul.mubr.msk.f32.vlgmr.msra.gmra.mrb[18].mxu0 %vm1656_vm9, %v7758_v43  ;;  %7762 = vmatmul.mubr.msk.f32.vlgmr.msra.gmra.mrb[18].mxu1 %vm1656_vm9, %v7758_v43  ;;  %v4257_v48 = vpop.permute.xlu1 %4256 }
 0x357   : > { %4283 = vmatpush1.msra.mxu0 %v4263_v61  ;;  %4354 = vmatpush1.msra.mxu1 %v4265_v60  ;;  %v4268_v62 = vsel %vm4262_vm15, %v4255_v29, %v4257_v48  ;;  %v4269_v17 = vsel %vm4262_vm15, %v4257_v48, %v4259_v35  ;;  %v7548_v60 = vld [vmem:[%s10011_s8] sm:$0xff] }
 0x358   : > { %4424 = vmatprep.subr.mxu0 %v4268_v62  ;;  %4346 = vmatprep.mubr.f32.mxu0 %v10019_v46 }
 0x359   : > { %4417 = vmatprep.mubr.f32.mxu1 %v10019_v46 }
 0x35a   : > { %7764 = vmatmul.mubr.msk.f32.vlgmr.msra.gmra.mrb[16].mxu0 %vm1656_vm9, %v7763_v13  ;;  %7765 = vmatmul.mubr.msk.f32.vlgmr.msra.gmra.mrb[16].mxu1 %vm1656_vm9, %v7763_v13  ;;  %v9509_v22 = vpop.permute.xlu1 %4260 }
 0x35b   : > { %4425 = vmatpush1.msra.mxu0 %v4267_v8  ;;  %v4270_v25 = vsel %vm4262_vm15, %v4259_v35, %v9509_v22  ;;  %4488 = vmatprep.mubr.f32.mxu0 %v10019_v46  ;;  %v7768_v35 = vld [vmem:[%s10010_s7 + $0x8] sm:$0xff] }
 0x35c   : > { %4495 = vmatprep.subr.mxu1 %v4270_v25  ;;  %4559 = vmatprep.mubr.f32.mxu1 %v10019_v46 }
 0x35d   : > { %4496 = vmatpush1.msra.mxu1 %v4269_v17 }
 0x35e   : > { %7766 = vmatmul.mubr.msk.f32.vlgmr.msra.gmra.mrb[18].mxu0 %vm1656_vm9, %v7763_v13  ;;  %7767 = vmatmul.mubr.msk.f32.vlgmr.msra.gmra.mrb[18].mxu1 %vm1656_vm9, %v7763_v13 }
 0x35f   : > { %4793 = vmatprep.mubr.f32.mxu1 %v10019_v46  ;;  %4722 = vmatprep.mubr.f32.mxu0 %v10019_v46 }
 0x366   : > { %v4578_v26 = vpop.permute.xlu0 %4577 }
 0x42d   : > { %v4348_v47 = vpop.f32.mrb[16].mxu0  ;;  %v4419_v34 = vpop.f32.mrb[16].mxu1 }
 0x42e   : > { %v4580_v54 = vadd.f32 %v4578_v26, %v4348_v47  ;;  %v4582_v2 = vadd.f32 %v4578_v26, %v4419_v34  ;;  %v4350_v42 = vpop.f32.mrb[17].mxu0  ;;  %v4421_v24 = vpop.f32.mrb[17].mxu1 }
 0x42f   : > { %v4583_v19 = vadd.f32 %v4578_v26, %v4421_v24  ;;  %v4581_v37 = vadd.f32 %v4578_v26, %v4350_v42 }
 0x430   : > { %v9520_v36 = vmax.f32 %v4580_v54, 0.0  ;;  %v9522_v31 = vmax.f32 %v4582_v2, 0.0 }
 0x431   : > { %v4490_v52 = vpop.f32.mrb[18].mxu0  ;;  %v4561_v40 = vpop.f32.mrb[18].mxu1  ;;  %v9528_v6 = vmax.f32 %v4583_v19, 0.0  ;;  %v9535_v4 = vmax.f32 %v4581_v37, 0.0 }
 0x432   : > { %4627 = vrot.lane.b32.xlu0 %v9522_v31, %s8284_s16  ;;  %4623 = vrot.lane.b32.xlu1 %v9520_v36, %s8284_s16  ;;  %v4492_v51 = vpop.f32.mrb[19].mxu0  ;;  %v4563_v16 = vpop.f32.mrb[19].mxu1  ;;  %v4606_v12 = vmul.f32 %v9522_v31, %v8975_v55  ;;  %v9539_v15 = vmul.f32 %v9522_v31, %v8992_v1  ;;  %v4604_v55 = vmul.f32 %v9520_v36, %v9023_v21 }
 0x433   : > { %v4607_v53 = vmul.f32 %v9528_v6, %v8972_v18  ;;  %v9556_v1 = vmul.f32 %v9520_v36, %v9033_v63  ;;  %v9560_v38 = vmul.f32 %v9528_v6, %v8995_v9  ;;  %v4605_v18 = vmul.f32 %v9535_v4, %v9019_v32 }
 0x434   : > { %v4586_v9 = vadd.f32 %v4578_v26, %v4561_v40  ;;  %v4597_v21 = vmul.f32 %v9535_v4, %v9036_v56  ;;  %v4587_v10 = vadd.f32 %v4578_v26, %v4563_v16  ;;  %v4584_v32 = vadd.f32 %v4578_v26, %v4490_v52 }
 0x435   : > { %v4585_v7 = vadd.f32 %v4578_v26, %v4492_v51 }
 0x436   : > { %4954 = vrot.lane.b32.xlu0 %v4606_v12, %s8286_s28  ;;  %4629 = vrot.lane.b32.xlu1 %v9528_v6, %s8284_s16  ;;  %v9578_v63 = vmax.f32 %v4586_v9, 0.0  ;;  %v9583_v43 = vmax.f32 %v4587_v10, 0.0  ;;  %v9588_v56 = vmax.f32 %v4584_v32, 0.0 }
 0x437   : > { %v9590_v5 = vmax.f32 %v4585_v7, 0.0 }
 0x438   : > { %v4610_v44 = vmul.f32 %v9578_v63, %v9093_v58  ;;  %v4602_v23 = vmul.f32 %v9578_v63, %v9117_v0  ;;  %v4611_v29 = vmul.f32 %v9583_v43, %v9096_v57  ;;  %v4603_v30 = vmul.f32 %v9583_v43, %v9114_v59 }
 0x439   : > { %v4608_v58 = vmul.f32 %v9588_v56, %v9137_v45  ;;  %v4600_v57 = vmul.f32 %v9588_v56, %v9162_v3  ;;  %v4609_v59 = vmul.f32 %v9590_v5, %v9147_v14  ;;  %v4601_v0 = vmul.f32 %v9590_v5, %v9155_v39 }
 0x43a   : > { %5283 = vrot.lane.b32.xlu0 %v9539_v15, %s8285_s27  ;;  %4625 = vrot.lane.b32.xlu1 %v9535_v4, %s8284_s16 }
 0x43e   : > { %5612 = vrot.lane.b32.xlu0 %v4606_v12, %s8288_s14  ;;  %6238 = vrot.lane.b32.xlu1 %v9539_v15, %s8287_s29 }
 0x442   : > { %4950 = vrot.lane.b32.xlu0 %v4604_v55, %s8286_s28  ;;  %4956 = vrot.lane.b32.xlu1 %v4607_v53, %s8286_s28 }
 0x446   : > { %5279 = vrot.lane.b32.xlu0 %v9556_v1, %s8285_s27  ;;  %5285 = vrot.lane.b32.xlu1 %v9560_v38, %s8285_s27 }
 0x44a   : > { %5608 = vrot.lane.b32.xlu0 %v4604_v55, %s8288_s14  ;;  %5614 = vrot.lane.b32.xlu1 %v4607_v53, %s8288_s14 }
 0x44e   : > { %6240 = vrot.lane.b32.xlu0 %v9560_v38, %s8287_s29  ;;  %4952 = vrot.lane.b32.xlu1 %v4605_v18, %s8286_s28 }
 0x452   : > { %6234 = vrot.lane.b32.xlu0 %v9556_v1, %s8287_s29  ;;  %5281 = vrot.lane.b32.xlu1 %v4597_v21, %s8285_s27 }
 0x456   : > { %5610 = vrot.lane.b32.xlu1 %v4605_v18, %s8288_s14  ;;  %4635 = vrot.lane.b32.xlu0 %v9578_v63, %s8284_s16 }
 0x45a   : > { %6236 = vrot.lane.b32.xlu0 %v4597_v21, %s8287_s29  ;;  %4637 = vrot.lane.b32.xlu1 %v9583_v43, %s8284_s16 }
 0x45e   : > { %4631 = vrot.lane.b32.xlu0 %v9588_v56, %s8284_s16  ;;  %4633 = vrot.lane.b32.xlu1 %v9590_v5, %s8284_s16  ;;  %s7593_s16 = sshll.u32 %s340_s17, 4  ;;  %s9961_s16 = int_to_ptr.vmem [resolvable:$true] %s7593_s16 }
 0x462   : > { %4962 = vrot.lane.b32.xlu0 %v4610_v44, %s8286_s28  ;;  %6567 = vrot.lane.b32.xlu1 %v4606_v12, %s8291_s23 }
 0x466   : > { %5291 = vrot.lane.b32.xlu0 %v4602_v23, %s8285_s27  ;;  %4964 = vrot.lane.b32.xlu1 %v4611_v29, %s8286_s28 }
 0x46a   : > { %5620 = vrot.lane.b32.xlu0 %v4610_v44, %s8288_s14  ;;  %5293 = vrot.lane.b32.xlu1 %v4603_v30, %s8285_s27 }
 0x46e   : > { %6246 = vrot.lane.b32.xlu0 %v4602_v23, %s8287_s29  ;;  %5622 = vrot.lane.b32.xlu1 %v4611_v29, %s8288_s14 }
 0x472   : > { %4958 = vrot.lane.b32.xlu0 %v4608_v58, %s8286_s28  ;;  %6242 = vrot.lane.b32.xlu1 %v4600_v57, %s8287_s29 }
 0x476   : > { %6565 = vrot.lane.b32.xlu0 %v4605_v18, %s8291_s23  ;;  %6248 = vrot.lane.b32.xlu1 %v4603_v30, %s8287_s29 }
 0x47a   : > { %5287 = vrot.lane.b32.xlu0 %v4600_v57, %s8285_s27  ;;  %4960 = vrot.lane.b32.xlu1 %v4609_v59, %s8286_s28 }
 0x47e   : > { %6569 = vrot.lane.b32.xlu0 %v4607_v53, %s8291_s23  ;;  %6571 = vrot.lane.b32.xlu1 %v4608_v58, %s8291_s23 }
 0x482   : > { %5616 = vrot.lane.b32.xlu0 %v4608_v58, %s8288_s14  ;;  %5289 = vrot.lane.b32.xlu1 %v4601_v0, %s8285_s27 }
 0x486   : > { %6563 = vrot.lane.b32.xlu0 %v4604_v55, %s8291_s23  ;;  %6577 = vrot.lane.b32.xlu1 %v4611_v29, %s8291_s23 }
 0x48a   : > { %6575 = vrot.lane.b32.xlu0 %v4610_v44, %s8291_s23  ;;  %5618 = vrot.lane.b32.xlu1 %v4609_v59, %s8288_s14  ;;  %s8219_s14 = scalar_lea.vmem %s9961_s16, 1024 }
 0x48b   : > { %p8220_p11 = scmp.ne.s32.totalorder %s9961_s16, %s8219_s14 }
 0x48d   : > { %p8221_p12 = pnand %p8220_p11, %p8383_p5 }
 0x48e   : > { %6894 = vrot.lane.b32.xlu0 %v9535_v4, %s8290_s21  ;;  %6896 = vrot.lane.b32.xlu1 %v9522_v31, %s8290_s21 }
 0x48f   : > { %p8222_p13 = pneg %p8221_p12 }
 0x492   : > { %6898 = vrot.lane.b32.xlu0 %v9528_v6, %s8290_s21  ;;  %6900 = vrot.lane.b32.xlu1 %v9588_v56, %s8290_s21 }
 0x496   : > { %6892 = vrot.lane.b32.xlu0 %v9520_v36, %s8290_s21  ;;  %6902 = vrot.lane.b32.xlu1 %v9590_v5, %s8290_s21 }
 0x49a   : > { %6904 = vrot.lane.b32.xlu0 %v9578_v63, %s8290_s21  ;;  %6244 = vrot.lane.b32.xlu1 %v4601_v0, %s8287_s29  ;;  %s9959_s29 = scalar_lea.hbm %s10012_s9, %s7819_s22 }
 0x49e   : > { %7223 = vrot.lane.b32.xlu0 %v4597_v21, %s8292_s24  ;;  %6906 = vrot.lane.b32.xlu1 %v9583_v43, %s8290_s21  ;;  %s8294_s21 = smov [#allocation2]  }
 0x4a2   : > { %7227 = vrot.lane.b32.xlu0 %v9560_v38, %s8292_s24  ;;  %6573 = vrot.lane.b32.xlu1 %v4609_v59, %s8291_s23  ;;  %s8223_s23 = sshll.u32 %s8294_s21, 4  ;;  %s8224_s23 = int_to_ptr.vmem [resolvable:$false] %s8223_s23 }
 0x4a3   : > { %p8226_p0 = scmp.lt.s32.totalorder %s9961_s16, %s8224_s23 }
 0x4a4   : > { %v4628_v45 = vpop.permute.xlu0 %4627  ;;  %v4624_v14 = vpop.permute.xlu1 %4623 }
 0x4a5   : > { %v4639_v8 = vsel %vm1275_vm5, %v8925_v11, %v4624_v14 }
 0x4a6   : > { %7221 = vrot.lane.b32.xlu0 %v9556_v1, %s8292_s24  ;;  %7225 = vrot.lane.b32.xlu1 %v9539_v15, %s8292_s24 }
 0x4a8   : > { %v4955_v39 = vpop.permute.xlu0 %4954  ;;  %v4630_v3 = vpop.permute.xlu1 %4629 }
 0x4a9   : > { %v4642_v33 = vsel %vm1275_vm5, %v4628_v45, %v4630_v3 }
 0x4aa   : > { %7233 = vrot.lane.b32.xlu0 %v4602_v23, %s8292_s24  ;;  %7229 = vrot.lane.b32.xlu1 %v4600_v57, %s8292_s24  ;;  %v4612_v23 = vld [vmem:[%s10010_s7] sm:$0xff] }
 0x4ab   : > { %4729 = vmatprep.subr.mxu1 %v4642_v33 }
 0x4ac   : > { %v9665_v61 = vpop.permute.xlu0 %5283  ;;  %v4626_v48 = vpop.permute.xlu1 %4625 }
 0x4ad   : > { %v4641_v62 = vsel %vm1275_vm5, %v4626_v48, %v4628_v45  ;;  %v4640_v13 = vsel %vm1275_vm5, %v4624_v14, %v4626_v48 }
 0x4ae   : > { %7551 = vperm.xlu0 %8214, %v7548_v60   ;;  %7231 = vrot.lane.b32.xlu1 %v4601_v0, %s8292_s24 }
 0x4af   : > { %4658 = vmatprep.subr.mxu0 %v4640_v13  ;;  %4730 = vmatpush1.msra.mxu1 %v4641_v62 }
 0x4b0   : > { %4659 = vmatpush1.msra.mxu0 %v4639_v8  ;;  %v9675_v25 = vpop.permute.xlu0 %5612  ;;  %v9677_v17 = vpop.permute.xlu1 %6238  ;;  %7770 = vmatmul.mubr.msk.f32.vlgmr.msra.gmra.mrb[20].mxu1 %vm1656_vm9, %v7768_v35 }
 0x4b1   : > { %7769 = vmatmul.mubr.msk.f32.vlgmr.msra.gmra.mrb[20].mxu0 %vm1656_vm9, %v7768_v35  ;;  %4935 = vmatprep.mubr.f32.mxu1 %v10019_v46 }
 0x4b2   : > { %7235 = vrot.lane.b32.xlu1 %v4603_v30, %s8292_s24  ;;  %4864 = vmatprep.mubr.f32.mxu0 %v10019_v46  ;;  %s8225_s24 = scalar_lea.vmem %s8224_s23, 2048 }
 0x4b3   : > { %p8227_p1 = scmp.lt.s32.totalorder %s8225_s24, %s8219_s14 }
 0x4b4   : > { %v4951_v26 = vpop.permute.xlu0 %4950  ;;  %v4957_v47 = vpop.permute.xlu1 %4956 }
 0x4b5   : > { %v4969_v9 = vsel %vm1971_vm10, %v4955_v39, %v4957_v47  ;;  %v4966_v44 = vsel %vm1971_vm10, %v8929_v28, %v4951_v26  ;;  %p8228_p2 = por %p8227_p1, %p8226_p0 }
 0x4b7   : > { %p8229_p3 = pnand %p8228_p2, %p8222_p13 }
 0x4b8   : > { %v9684_v11 = vpop.permute.xlu0 %5279  ;;  %v9686_v34 = vpop.permute.xlu1 %5285 }
 0x4bc   : > { %v9688_v54 = vpop.permute.xlu0 %5608  ;;  %v9690_v2 = vpop.permute.xlu1 %5614 }
 0x4c0   : > { %v9692_v42 = vpop.permute.xlu0 %6240  ;;  %v4953_v24 = vpop.permute.xlu1 %4952 }
 0x4c1   : > { %v9697_v19 = vsel %vm3266_vm13, %v9677_v17, %v9692_v42  ;;  %v4967_v21 = vsel %vm1971_vm10, %v4951_v26, %v4953_v24  ;;  %v4968_v10 = vsel %vm1971_vm10, %v4953_v24, %v4955_v39 }
 0x4c4   : > { %v9699_v52 = vpop.permute.xlu0 %6234  ;;  %v5282_v40 = vpop.permute.xlu1 %5281 }
 0x4c5   : > { %v5297_v8 = vsel %vm2304_vm11, %v5282_v40, %v9665_v61 }
 0x4c8   : > { %v4636_v51 = vpop.permute.xlu0 %4635  ;;  %v9701_v16 = vpop.permute.xlu1 %5610 }
 0x4cc   : > { %v9703_v37 = vpop.permute.xlu0 %6236  ;;  %v4638_v12 = vpop.permute.xlu1 %4637 }
 0x4cd   : > { %v4646_v15 = vsel %vm1275_vm5, %v4636_v51, %v4638_v12 }
 0x4ce   : > { %4871 = vmatprep.subr.mxu1 %v4646_v15 }
 0x4d0   : > { %v4632_v55 = vpop.permute.xlu0 %4631  ;;  %v4634_v53 = vpop.permute.xlu1 %4633 }
 0x4d1   : > { %v4643_v1 = vsel %vm1275_vm5, %v4630_v3, %v4632_v55  ;;  %v4645_v38 = vsel %vm1275_vm5, %v4634_v53, %v4636_v51  ;;  %v4644_v18 = vsel %vm1275_vm5, %v4632_v55, %v4634_v53  ;;  %v5295_v51 = vsel %vm2304_vm11, %v8927_v27, %v9684_v11 }
 0x4d2   : > { %4800 = vmatprep.subr.mxu0 %v4644_v18  ;;  %4872 = vmatpush1.msra.mxu1 %v4645_v38  ;;  %v5627_v53 = vsel %vm2636_vm12, %v9675_v25, %v9690_v2 }
 0x4d3   : > { %4801 = vmatpush1.msra.mxu0 %v4643_v1  ;;  %5056 = vmatprep.subr.mxu1 %v4969_v9  ;;  %v5626_v1 = vsel %vm2636_vm12, %v9701_v16, %v9675_v25  ;;  %v5624_v9 = vsel %vm2636_vm12, %v8933_v20, %v9688_v54 }
 0x4d4   : > { %v4963_v32 = vpop.permute.xlu0 %4962  ;;  %7772 = vmatmul.mubr.msk.f32.vlgmr.msra.gmra.mrb[22].mxu1 %vm1656_vm9, %v7768_v35  ;;  %4985 = vmatprep.subr.mxu0 %v4967_v21  ;;  %v9713_v7 = vpop.permute.xlu1 %6567  ;;  %v7782_v21 = vld [vmem:[%s10010_s7 + $0x18] sm:$0xff] }
 0x4d5   : > { %5057 = vmatpush1.msra.mxu1 %v4968_v10  ;;  %7771 = vmatmul.mubr.msk.f32.vlgmr.msra.gmra.mrb[22].mxu0 %vm1656_vm9, %v7768_v35  ;;  %v5298_v35 = vsel %vm2304_vm11, %v9665_v61, %v9686_v34  ;;  %v7777_v61 = vld [vmem:[%s10010_s7 + $0x10] sm:$0xff] }
 0x4d6   : > { %4986 = vmatpush1.msra.mxu0 %v4966_v44  ;;  %5120 = vmatprep.mubr.f32.mxu1 %v10019_v46 }
 0x4d7   : > { %5049 = vmatprep.mubr.f32.mxu0 %v10019_v46 }
 0x4d8   : > { %v5292_v29 = vpop.permute.xlu0 %5291  ;;  %v4965_v30 = vpop.permute.xlu1 %4964  ;;  %7774 = vmatmul.mubr.msk.f32.vlgmr.msra.gmra.mrb[20].mxu1 %vm1656_vm9, %v4612_v23 }
 0x4d9   : > { %v4973_v58 = vsel %vm1971_vm10, %v4963_v32, %v4965_v30  ;;  %7773 = vmatmul.mubr.msk.f32.vlgmr.msra.gmra.mrb[20].mxu0 %vm1656_vm9, %v4612_v23  ;;  %5262 = vmatprep.mubr.f32.mxu1 %v10019_v46 }
 0x4da   : > { %5198 = vmatprep.subr.mxu1 %v4973_v58  ;;  %5191 = vmatprep.mubr.f32.mxu0 %v10019_v46 }
 0x4dc   : > { %v9728_v28 = vpop.permute.xlu0 %5620  ;;  %v5294_v57 = vpop.permute.xlu1 %5293 }
 0x4dd   : > { %v5302_v12 = vsel %vm2304_vm11, %v5292_v29, %v5294_v57 }
 0x4e0   : > { %v9730_v59 = vpop.permute.xlu0 %6246  ;;  %v5623_v0 = vpop.permute.xlu1 %5622 }
 0x4e1   : > { %v5631_v25 = vsel %vm2636_vm12, %v9728_v28, %v5623_v0  ;;  %v7797_v0 = vld [vmem:[%s10010_s7 + $0x30] sm:$0xff] }
 0x4e4   : > { %v4959_v45 = vpop.permute.xlu0 %4958  ;;  %v9732_v14 = vpop.permute.xlu1 %6242 }
 0x4e5   : > { %v4970_v13 = vsel %vm1971_vm10, %v4957_v47, %v4959_v45  ;;  %v5296_v47 = vsel %vm2304_vm11, %v9684_v11, %v5282_v40 }
 0x4e8   : > { %v9734_v39 = vpop.permute.xlu0 %6565  ;;  %v9736_v3 = vpop.permute.xlu1 %6248 }
 0x4e9   : > { %v6580_v57 = vsel %vm3599_vm14, %v9734_v39, %v9713_v7 }
 0x4ec   : > { %v5288_v33 = vpop.permute.xlu0 %5287  ;;  %v4961_v60 = vpop.permute.xlu1 %4960 }
 0x4ed   : > { %v4972_v48 = vsel %vm1971_vm10, %v4961_v60, %v4963_v32  ;;  %v4971_v62 = vsel %vm1971_vm10, %v4959_v45, %v4961_v60  ;;  %v5299_v55 = vsel %vm2304_vm11, %v9686_v34, %v5288_v33  ;;  %v5625_v34 = vsel %vm2636_vm12, %v9688_v54, %v9701_v16 }
 0x4ee   : > { %5127 = vmatprep.subr.mxu0 %v4971_v62  ;;  %5199 = vmatpush1.msra.mxu1 %v4972_v48 }
 0x4ef   : > { %5128 = vmatpush1.msra.mxu0 %v4970_v13  ;;  %7776 = vmatmul.mubr.msk.f32.vlgmr.msra.gmra.mrb[22].mxu1 %vm1656_vm9, %v4612_v23 }
 0x4f0   : > { %5385 = vmatprep.subr.mxu1 %v5298_v35  ;;  %v9747_v26 = vpop.permute.xlu0 %6569  ;;  %7775 = vmatmul.mubr.msk.f32.vlgmr.msra.gmra.mrb[22].mxu0 %vm1656_vm9, %v4612_v23  ;;  %v9752_v24 = vpop.permute.xlu1 %6571 }
 0x4f1   : > { %5314 = vmatprep.subr.mxu0 %v5296_v47  ;;  %5386 = vmatpush1.msra.mxu1 %v5297_v8  ;;  %v6581_v30 = vsel %vm3599_vm14, %v9713_v7, %v9747_v26 }
 0x4f2   : > { %5315 = vmatpush1.msra.mxu0 %v5295_v51  ;;  %5527 = vmatprep.subr.mxu1 %v5302_v12 }
 0x4f3   : > { %5449 = vmatprep.mubr.f32.mxu1 %v10019_v46  ;;  %5378 = vmatprep.mubr.f32.mxu0 %v10019_v46 }
 0x4f4   : > { %7779 = vmatmul.mubr.msk.f32.vlgmr.msra.gmra.mrb[20].mxu1 %vm1656_vm9, %v7777_v61  ;;  %v5617_v40 = vpop.permute.xlu0 %5616  ;;  %7778 = vmatmul.mubr.msk.f32.vlgmr.msra.gmra.mrb[20].mxu0 %vm1656_vm9, %v7777_v61  ;;  %v5290_v27 = vpop.permute.xlu1 %5289 }
 0x4f5   : > { %v5301_v11 = vsel %vm2304_vm11, %v5290_v27, %v5292_v29  ;;  %v5300_v15 = vsel %vm2304_vm11, %v5288_v33, %v5290_v27  ;;  %5591 = vmatprep.mubr.f32.mxu1 %v10019_v46  ;;  %5520 = vmatprep.mubr.f32.mxu0 %v10019_v46  ;;  %v5628_v32 = vsel %vm2636_vm12, %v9690_v2, %v5617_v40  ;;  %v7787_v2 = vld [vmem:[%s10010_s7 + $0x20] sm:$0xff] }
 0x4f6   : > { %5456 = vmatprep.subr.mxu0 %v5300_v15  ;;  %5528 = vmatpush1.msra.mxu1 %v5301_v11 }
 0x4f7   : > { %5457 = vmatpush1.msra.mxu0 %v5299_v55  ;;  %5714 = vmatprep.subr.mxu1 %v5627_v53  ;;  %v7807_v53 = vld [vmem:[%s10010_s7 + $0x40] sm:$0xff] }
 0x4f8   : > { %7781 = vmatmul.mubr.msk.f32.vlgmr.msra.gmra.mrb[22].mxu1 %vm1656_vm9, %v7777_v61  ;;  %v9778_v38 = vpop.permute.xlu0 %6563  ;;  %7780 = vmatmul.mubr.msk.f32.vlgmr.msra.gmra.mrb[22].mxu0 %vm1656_vm9, %v7777_v61  ;;  %v9784_v18 = vpop.permute.xlu1 %6577 }
 0x4f9   : > { %5643 = vmatprep.subr.mxu0 %v5625_v34  ;;  %5715 = vmatpush1.msra.mxu1 %v5626_v1  ;;  %v6579_v45 = vsel %vm3599_vm14, %v9778_v38, %v9734_v39 }
 0x4fa   : > { %5644 = vmatpush1.msra.mxu0 %v5624_v9  ;;  %5856 = vmatprep.subr.mxu1 %v5631_v25 }
 0x4fb   : > { %5778 = vmatprep.mubr.f32.mxu1 %v10019_v46  ;;  %5707 = vmatprep.mubr.f32.mxu0 %v10019_v46 }
 0x4fc   : > { %7784 = vmatmul.mubr.msk.f32.vlgmr.msra.gmra.mrb[20].mxu1 %vm1656_vm9, %v7782_v21  ;;  %v9797_v16 = vpop.permute.xlu0 %6575  ;;  %7783 = vmatmul.mubr.msk.f32.vlgmr.msra.gmra.mrb[20].mxu0 %vm1656_vm9, %v7782_v21  ;;  %v5619_v20 = vpop.permute.xlu1 %5618 }
 0x4fd   : > { %v5630_v54 = vsel %vm2636_vm12, %v5619_v20, %v9728_v28  ;;  %v5629_v10 = vsel %vm2636_vm12, %v5617_v40, %v5619_v20  ;;  %5920 = vmatprep.mubr.f32.mxu1 %v10019_v46  ;;  %5849 = vmatprep.mubr.f32.mxu0 %v10019_v46  ;;  %v6585_v7 = vsel %vm3599_vm14, %v9797_v16, %v9784_v18 }
 0x4fe   : > { %5785 = vmatprep.subr.mxu0 %v5629_v10  ;;  %5857 = vmatpush1.msra.mxu1 %v5630_v54 }
 0x4ff   : > { %5786 = vmatpush1.msra.mxu0 %v5628_v32  ;;  %6011 = vmatprep.subr.mxu1 %v9528_v6 }
 0x500   : > { %7786 = vmatmul.mubr.msk.f32.vlgmr.msra.gmra.mrb[22].mxu1 %vm1656_vm9, %v7782_v21  ;;  %v9809_v44 = vpop.permute.xlu0 %6894  ;;  %7785 = vmatmul.mubr.msk.f32.vlgmr.msra.gmra.mrb[22].mxu0 %vm1656_vm9, %v7782_v21  ;;  %v9812_v23 = vpop.permute.xlu1 %6896 }
 0x501   : > { %5940 = vmatprep.subr.mxu0 %v9535_v4  ;;  %6012 = vmatpush1.msra.mxu1 %v9522_v31  ;;  %v6251_v31 = vsel %vm3266_vm13, %v9703_v37, %v9677_v17  ;;  %v7792_v17 = vld [vmem:[%s10010_s7 + $0x28] sm:$0xff]  ;;  %v6909_v62 = vsel %vm1279_vm7, %v9809_v44, %v9812_v23 }
 0x502   : > { %5941 = vmatpush1.msra.mxu0 %v9520_v36  ;;  %6153 = vmatprep.subr.mxu1 %v9583_v43  ;;  %v6253_v36 = vsel %vm3266_vm13, %v9692_v42, %v9732_v14  ;;  %v6256_v42 = vsel %vm3266_vm13, %v9730_v59, %v9736_v3 }
 0x503   : > { %6075 = vmatprep.mubr.f32.mxu1 %v10019_v46  ;;  %6082 = vmatprep.subr.mxu0 %v9590_v5  ;;  %v6250_v5 = vsel %vm3266_vm13, %v9699_v52, %v9703_v37 }
 0x504   : > { %6004 = vmatprep.mubr.f32.mxu0 %v10019_v46  ;;  %7789 = vmatmul.mubr.msk.f32.vlgmr.msra.gmra.mrb[20].mxu1 %vm1656_vm9, %v7787_v2  ;;  %v9825_v6 = vpop.permute.xlu0 %6898  ;;  %v9827_v4 = vpop.permute.xlu1 %6900 }
 0x505   : > { %6154 = vmatpush1.msra.mxu1 %v9578_v63  ;;  %7788 = vmatmul.mubr.msk.f32.vlgmr.msra.gmra.mrb[20].mxu0 %vm1656_vm9, %v7787_v2  ;;  %v6911_v39 = vsel %vm1279_vm7, %v9825_v6, %v9827_v4  ;;  %v6910_v60 = vsel %vm1279_vm7, %v9812_v23, %v9825_v6 }
 0x506   : > { %6083 = vmatpush1.msra.mxu0 %v9588_v56  ;;  %6340 = vmatprep.subr.mxu1 %v6253_v36  ;;  %v6257_v56 = vsel %vm3266_vm13, %v9736_v3, %v8931_v49  ;;  %v6582_v49 = vsel %vm3599_vm14, %v9747_v26, %v9752_v24  ;;  %v7802_v26 = vld [vmem:[%s10010_s7 + $0x38] sm:$0xff] }
 0x507   : > { %6269 = vmatprep.subr.mxu0 %v6251_v31  ;;  %6217 = vmatprep.mubr.f32.mxu1 %v10019_v46 }
 0x508   : > { %6146 = vmatprep.mubr.f32.mxu0 %v10019_v46  ;;  %7791 = vmatmul.mubr.msk.f32.vlgmr.msra.gmra.mrb[22].mxu1 %vm1656_vm9, %v7787_v2  ;;  %v6893_v63 = vpop.permute.xlu0 %6892  ;;  %v9841_v43 = vpop.permute.xlu1 %6902 }
 0x509   : > { %6341 = vmatpush1.msra.mxu1 %v9697_v19  ;;  %7790 = vmatmul.mubr.msk.f32.vlgmr.msra.gmra.mrb[22].mxu0 %vm1656_vm9, %v7787_v2  ;;  %v6908_v35 = vsel %vm1279_vm7, %v6893_v63, %v9809_v44 }
 0x50a   : > { %6270 = vmatpush1.msra.mxu0 %v6250_v5  ;;  %6482 = vmatprep.subr.mxu1 %v6257_v56 }
 0x50b   : > { %6404 = vmatprep.mubr.f32.mxu1 %v10019_v46  ;;  %6333 = vmatprep.mubr.f32.mxu0 %v10019_v46 }
 0x50c   : > { %7794 = vmatmul.mubr.msk.f32.vlgmr.msra.gmra.mrb[20].mxu1 %vm1656_vm9, %v7792_v17  ;;  %v6905_v19 = vpop.permute.xlu0 %6904  ;;  %v6245_v52 = vpop.permute.xlu1 %6244 }
 0x50d   : > { %6483 = vmatpush1.msra.mxu1 %v6256_v42  ;;  %7793 = vmatmul.mubr.msk.f32.vlgmr.msra.gmra.mrb[20].mxu0 %vm1656_vm9, %v7792_v17  ;;  %v6254_v37 = vsel %vm3266_vm13, %v9732_v14, %v6245_v52  ;;  %v6255_v29 = vsel %vm3266_vm13, %v6245_v52, %v9730_v59  ;;  %v6586_v59 = vsel %vm3599_vm14, %v9784_v18, %v9311_v41 }
 0x50e   : > { %6669 = vmatprep.subr.mxu1 %v6582_v49  ;;  %6411 = vmatprep.subr.mxu0 %v6255_v29  ;;  %v6913_v47 = vsel %vm1279_vm7, %v9841_v43, %v6905_v19 }
 0x50f   : > { %6546 = vmatprep.mubr.f32.mxu1 %v10019_v46  ;;  %6412 = vmatpush1.msra.mxu0 %v6254_v37 }
 0x510   : > { %6475 = vmatprep.mubr.f32.mxu0 %v10019_v46  ;;  %7796 = vmatmul.mubr.msk.f32.vlgmr.msra.gmra.mrb[22].mxu1 %vm1656_vm9, %v7792_v17  ;;  %v7224_v58 = vpop.permute.xlu0 %7223  ;;  %v6907_v28 = vpop.permute.xlu1 %6906 }
 0x511   : > { %6670 = vmatpush1.msra.mxu1 %v6581_v30  ;;  %7795 = vmatmul.mubr.msk.f32.vlgmr.msra.gmra.mrb[22].mxu0 %vm1656_vm9, %v7792_v17  ;;  %v6915_v13 = vsel %vm1279_vm7, %v6907_v28, %v9400_v50  ;;  %v6914_v51 = vsel %vm1279_vm7, %v6905_v19, %v6907_v28 }
 0x512   : > { %6598 = vmatprep.subr.mxu0 %v6580_v57  ;;  %6811 = vmatprep.subr.mxu1 %v6586_v59 }
 0x513   : > { %6599 = vmatpush1.msra.mxu0 %v6579_v45  ;;  %6733 = vmatprep.mubr.f32.mxu1 %v10019_v46 }
 0x514   : > { %6662 = vmatprep.mubr.f32.mxu0 %v10019_v46  ;;  %7799 = vmatmul.mubr.msk.f32.vlgmr.msra.gmra.mrb[20].mxu1 %vm1656_vm9, %v7797_v0  ;;  %v7228_v41 = vpop.permute.xlu0 %7227  ;;  %v6574_v14 = vpop.permute.xlu1 %6573 }
 0x515   : > { %6812 = vmatpush1.msra.mxu1 %v6585_v7  ;;  %7798 = vmatmul.mubr.msk.f32.vlgmr.msra.gmra.mrb[20].mxu0 %vm1656_vm9, %v7797_v0  ;;  %v6583_v3 = vsel %vm3599_vm14, %v9752_v24, %v6574_v14  ;;  %v6584_v33 = vsel %vm3599_vm14, %v6574_v14, %v9797_v16  ;;  %v6912_v24 = vsel %vm1279_vm7, %v9827_v4, %v9841_v43 }
 0x516   : > { %6998 = vmatprep.subr.mxu1 %v6911_v39  ;;  %6740 = vmatprep.subr.mxu0 %v6584_v33 }
 0x517   : > { %6875 = vmatprep.mubr.f32.mxu1 %v10019_v46  ;;  %6741 = vmatpush1.msra.mxu0 %v6583_v3 }
 0x518   : > { %6804 = vmatprep.mubr.f32.mxu0 %v10019_v46  ;;  %7801 = vmatmul.mubr.msk.f32.vlgmr.msra.gmra.mrb[22].mxu1 %vm1656_vm9, %v7797_v0  ;;  %v7226_v48 = vpop.permute.xlu1 %7225  ;;  %v7222_v8 = vpop.permute.xlu0 %7221 }
 0x519   : > { %6999 = vmatpush1.msra.mxu1 %v6910_v60  ;;  %7800 = vmatmul.mubr.msk.f32.vlgmr.msra.gmra.mrb[22].mxu0 %vm1656_vm9, %v7797_v0  ;;  %v7238_v61 = vsel %vm4262_vm15, %v7224_v58, %v7226_v48  ;;  %v7237_v11 = vsel %vm4262_vm15, %v7222_v8, %v7224_v58  ;;  %v7239_v15 = vsel %vm4262_vm15, %v7226_v48, %v7228_v41 }
 0x51a   : > { %6927 = vmatprep.subr.mxu0 %v6909_v62  ;;  %7140 = vmatprep.subr.mxu1 %v6915_v13 }
 0x51b   : > { %6928 = vmatpush1.msra.mxu0 %v6908_v35  ;;  %7062 = vmatprep.mubr.f32.mxu1 %v10019_v46 }
 0x51c   : > { %7069 = vmatprep.subr.mxu0 %v6913_v47  ;;  %6991 = vmatprep.mubr.f32.mxu0 %v10019_v46  ;;  %v7230_v50 = vpop.permute.xlu1 %7229  ;;  %v7234_v40 = vpop.permute.xlu0 %7233 }
 0x51d   : > { %7804 = vmatmul.mubr.msk.f32.vlgmr.msra.gmra.mrb[20].mxu1 %vm1656_vm9, %v7802_v26  ;;  %7803 = vmatmul.mubr.msk.f32.vlgmr.msra.gmra.mrb[20].mxu0 %vm1656_vm9, %v7802_v26  ;;  %v7240_v12 = vsel %vm4262_vm15, %v7228_v41, %v7230_v50 }
 0x51e   : > { %7141 = vmatpush1.msra.mxu1 %v6914_v51  ;;  %7070 = vmatpush1.msra.mxu0 %v6912_v24 }
 0x51f   : > { %7256 = vmatprep.subr.mxu0 %v7238_v61  ;;  %7204 = vmatprep.mubr.f32.mxu1 %v10019_v46 }
 0x520   : > { %7327 = vmatprep.subr.mxu1 %v7240_v12  ;;  %7133 = vmatprep.mubr.f32.mxu0 %v10019_v46  ;;  %v7232_v27 = vpop.permute.xlu1 %7231 }
 0x521   : > { %7806 = vmatmul.mubr.msk.f32.vlgmr.msra.gmra.mrb[22].mxu1 %vm1656_vm9, %v7802_v26  ;;  %7805 = vmatmul.mubr.msk.f32.vlgmr.msra.gmra.mrb[22].mxu0 %vm1656_vm9, %v7802_v26  ;;  %v7242_v55 = vsel %vm4262_vm15, %v7232_v27, %v7234_v40  ;;  %v7241_v38 = vsel %vm4262_vm15, %v7230_v50, %v7232_v27 }
 0x522   : > { %7328 = vmatpush1.msra.mxu1 %v7239_v15  ;;  %7257 = vmatpush1.msra.mxu0 %v7237_v11 }
 0x523   : > { %7391 = vmatprep.mubr.f32.mxu1 %v10019_v46  ;;  %7398 = vmatprep.subr.mxu0 %v7242_v55 }
 0x524   : > { %7320 = vmatprep.mubr.f32.mxu0 %v10019_v46  ;;  %v7236_v1 = vpop.permute.xlu1 %7235 }
 0x525   : > { %7809 = vmatmul.mubr.msk.f32.vlgmr.msra.gmra.mrb[20].mxu1 %vm1656_vm9, %v7807_v53  ;;  %7808 = vmatmul.mubr.msk.f32.vlgmr.msra.gmra.mrb[20].mxu0 %vm1656_vm9, %v7807_v53  ;;  %v7243_v34 = vsel %vm4262_vm15, %v7234_v40, %v7236_v1  ;;  %v7244_v18 = vsel %vm4262_vm15, %v7236_v1, %v9509_v22 }
 0x526   : > { %7399 = vmatpush1.msra.mxu0 %v7241_v38  ;;  %7469 = vmatprep.subr.mxu1 %v7244_v18 }
 0x527   : > { %7462 = vmatprep.mubr.f32.mxu0 %v10019_v46  ;;  %7470 = vmatpush1.msra.mxu1 %v7243_v34 }
 0x528   : > { %7533 = vmatprep.mubr.f32.mxu1 %v10019_v46 }
 0x529   : > { %7810 = vmatmul.mubr.msk.f32.vlgmr.msra.gmra.mrb[22].mxu0 %vm1656_vm9, %v7807_v53  ;;  %7811 = vmatmul.mubr.msk.f32.vlgmr.msra.gmra.mrb[22].mxu1 %vm1656_vm9, %v7807_v53 }
 0x52d   : > { %v7552_v9 = vpop.permute.xlu0 %7551 }
 0x5f8   : > { %v7393_v25 = vpop.f32.mrb[20].mxu1  ;;  %v7322_v21 = vpop.f32.mrb[20].mxu0 }
 0x5f9   : > { %v7556_v16 = vadd.f32 %v7552_v9, %v7393_v25  ;;  %v7554_v20 = vadd.f32 %v7552_v9, %v7322_v21  ;;  %v7395_v22 = vpop.f32.mrb[21].mxu1  ;;  %v7324_v54 = vpop.f32.mrb[21].mxu0 }
 0x5fa   : > { %v7557_v10 = vadd.f32 %v7552_v9, %v7395_v22  ;;  %v7555_v32 = vadd.f32 %v7552_v9, %v7324_v54 }
 0x5fb   : > { %v7564_v44 = vmax.f32 %v7556_v16, 0.0  ;;  %v7562_v23 = vmax.f32 %v7554_v20, 0.0 }
 0x5fc   : > { %v7565_v46 = vmax.f32 %v7557_v10, 0.0  ;;  %v7563_v2 = vmax.f32 %v7555_v32, 0.0  ;;  %v7464_v6 = vpop.f32.mrb[22].mxu0  ;;  %v7535_v4 = vpop.f32.mrb[22].mxu1 }
 0x5fd   : > { %7572 = vst [vmem:[%s340_s17 + $0x10] sm:$0xff] %v7564_v44  ;;  %7570 = vst [vmem:[%s340_s17] sm:$0xff] %v7562_v23  ;;  %v7558_v36 = vadd.f32 %v7552_v9, %v7464_v6  ;;  %v7560_v31 = vadd.f32 %v7552_v9, %v7535_v4  ;;  %v7466_v63 = vpop.f32.mrb[23].mxu0  ;;  %v7537_v43 = vpop.f32.mrb[23].mxu1 }
 0x5fe   : > { %7573 = vst [vmem:[%s340_s17 + $0x18] sm:$0xff] %v7565_v46  ;;  %7571 = vst [vmem:[%s340_s17 + $0x8] sm:$0xff] %v7563_v2  ;;  %v7559_v5 = vadd.f32 %v7552_v9, %v7466_v63  ;;  %v7561_v56 = vadd.f32 %v7552_v9, %v7537_v43 }
 0x5ff   : > { %v7566_v17 = vmax.f32 %v7558_v36, 0.0  ;;  %v7568_v42 = vmax.f32 %v7560_v31, 0.0 }
 0x600   : > { %v7567_v19 = vmax.f32 %v7559_v5, 0.0  ;;  %v7569_v52 = vmax.f32 %v7561_v56, 0.0 }
 0x601   : > { %7574 = vst [vmem:[%s340_s17 + $0x20] sm:$0xff] %v7566_v17  ;;  %7576 = vst [vmem:[%s340_s17 + $0x30] sm:$0xff] %v7568_v42 }
 0x602   : > { %7575 = vst [vmem:[%s340_s17 + $0x28] sm:$0xff] %v7567_v19  ;;  %7577 = vst [vmem:[%s340_s17 + $0x38] sm:$0xff] %v7569_v52 }
 0x603   : > { %8232 = shalt.err (!%p8229_p3)
}
 0x604   : > { %s8233_s25 = scalar_lea.hbm %s9959_s29, 1024  ;;  %s8237_s22 = scalar_lea.hbm %s10012_s9, 2048 }
 0x605   : > { %p8234_p4 = scmp.ne.s32.totalorder %s9959_s29, %s8233_s25  ;;  %p8238_p9 = scmp.lt.u32.totalorder %s9959_s29, %s10012_s9 }
 0x606   : > { %p8239_p10 = scmp.lt.u32.totalorder %s8237_s22, %s8233_s25  ;;  %p8241_p12 = scmp.lt.u32.totalorder %s8233_s25, %s9959_s29 }
 0x607   : > { %p8235_p7 = pnand %p8234_p4, %p8383_p5 }
 0x608   : > { %p8240_p11 = por %p8239_p10, %p8238_p9 }
 0x609   : > { %p8236_p8 = pneg %p8235_p7 }
 0x60a   : > { %p8242_p13 = por %p8241_p12, %p8240_p11 }
 0x60c   : > { %p8243_p0 = pnand %p8242_p13, %p8236_p8 }
 0x60e   : > { %8246 = shalt.err (!%p8243_p0)
}
 0x60f   : > { %8164 = dma.vmem_to_hbm [thread:$0]  (%p8383_p5), %s9961_s16, 1024, %s9959_s29, %s7579_s13  }
 0x610 PF: > { %p8170_p1 = scmp.ge.s32.totalorder %s8281_s12, 2  ;;  %s7605_s14 = sand.u32 1, %s8269_s30  }
 0x611   : > { %s7606_s21 = scalar_lea.sflag [#allocation3], %s7605_s14 }
 0x612   : > { %p8167_p2 = pnand %p8170_p1, %p8387_p6 }
 0x614   : > { %8264 = dma.done.wait (!%p8167_p2), %s7606_s21, 1024  }
 0x615   : > { %8266 = vsyncadd (!%p8167_p2), %s7606_s21, 4294966272  ;;  %p19_p3 = scmp.ge.s32.totalorder %s8370_s15, 4   ;;  %s10020_s30 = smov %s8273_s10 }
 0x616   : > { %s10021_s10 = smov %s8277_s11  ;;  %s10022_s11 = smov %s8381_s18 }
 0x617   : > { %s10023_s12 = smov %s8370_s15  ;;  %21 = sbr.rel (!%p19_p3) target bundleno = 3 (0x3), region = 113 }
 0x61e   :  { %7611 = vsyncpa [#allocation3], 1 }
 0x61f   :  { %7613 = vsyncpa [#allocation3 + $0x1], 1 }

</bundles_post_ra>
